<compile_context>
chip_gen: v7x
topology: tpu7x:2x2x1
jax: 0.10.0
libtpu: 0.0.40
codegen_flags: <defaults>
</compile_context>

<pallas_src>
import functools
import math

import jax
import jax.numpy as jnp
from jax.experimental import pallas as pl
from jax.experimental.pallas import tpu as pltpu

_LANE = 128


# ---------------------------------------------------------------------------
# Small host-side helpers (plain JAX layout plumbing)
# ---------------------------------------------------------------------------
def _round_up(x, m):
    return ((x + m - 1) // m) * m


def _pad_to(a, shape):
    pads = [(0, t - s) for s, t in zip(a.shape, shape)]
    return jnp.pad(a, pads)


def _pack_conv(w, c_pad):
    """(K, cin, cout) conv weight -> lane-dense flattened (K*c_pad, c_pad)."""
    k, cin, cout = w.shape
    wp = jnp.zeros((k, c_pad, c_pad), w.dtype).at[:, :cin, :cout].set(w)
    return wp.reshape(k * c_pad, c_pad)


# ---------------------------------------------------------------------------
# Fused Pallas kernel: all temporal blocks + regression head
# ---------------------------------------------------------------------------
def fused_tcn_kernel(*refs, num_levels, kernel_size, L, B_blk, pad,
                     has_downsample, with_stats, stablize, act_fn,
                     add_target, target):
    it = iter(refs)
    t_ref = next(it)            # (B_blk*L, 1) int32: time index within sequence
    x_ref = next(it)            # (B_blk*L, C) flipped, channel-padded input
    w1s_ref = next(it)          # (num_levels, K*C, C)
    b1s_ref = next(it)          # (num_levels, 1, C)
    w2s_ref = next(it)          # (num_levels, K*C, C)
    b2s_ref = next(it)          # (num_levels, 1, C)
    wd_ref = next(it) if has_downsample else None   # (C, C)
    bd_ref = next(it) if has_downsample else None   # (1, C)
    s_ref = next(it) if with_stats else None        # (B_blk, Sp)
    fws_ref = next(it) if with_stats else None      # (Sp, LHp)
    fwt_ref = next(it)          # (C, LHp)
    fb_ref = next(it)           # (1, LHp)
    ow_ref = next(it)           # (LHp, OUTP)
    ob_ref = next(it)           # (1, OUTP)
    o_ref = next(it)            # (B_blk, OUTP) output
    xbuf = next(it)             # VMEM scratch (pad + B_blk*L, C) line buffer

    BL = B_blk * L
    C = x_ref.shape[1]
    t_idx = t_ref[...]          # (BL, 1)

    # Zero the causal left-padding rows of the line buffer once per step.
    if pad > 0:
        xbuf[pl.ds(0, pad), :] = jnp.zeros((pad, C), jnp.float32)

    def causal_conv(a, w_flat, bias, dilation):
        # Stage the input in the line buffer; each tap becomes a static
        # shifted VMEM view (no concat-with-zeros copies).
        xbuf[pl.ds(pad, BL), :] = a
        cols = []
        for k in range(kernel_size):
            off = (kernel_size - 1 - k) * dilation
            if off == 0:
                cols.append(a)
            else:
                xs = xbuf[pl.ds(pad - off, BL), :]
                # Mask taps that would cross a sequence boundary (causal pad).
                cols.append(jnp.where(t_idx >= off, xs, 0.0))
        # im2col: a single MXU push with contraction dim K*C.
        im2col = cols[0] if kernel_size == 1 else jnp.concatenate(cols, axis=1)
        return jnp.dot(im2col, w_flat, preferred_element_type=jnp.float32) + bias

    act = x_ref[...]
    for lvl in range(num_levels):
        d = 2 ** lvl
        w1 = w1s_ref[lvl]
        b1 = b1s_ref[lvl]
        w2 = w2s_ref[lvl]
        b2 = b2s_ref[lvl]
        # dropout layers are identity in eval mode
        out1 = jnp.maximum(causal_conv(act, w1, b1, d), 0.0)
        out2 = jnp.maximum(causal_conv(out1, w2, b2, d), 0.0)
        if lvl == 0 and has_downsample:
            res = jnp.dot(act, wd_ref[...],
                          preferred_element_type=jnp.float32) + bd_ref[...]
        else:
            res = act
        act = jnp.maximum(out2 + res, 0.0)

    # ---- head, fused: only the last timestep of each sequence is consumed ---
    rows = [act[b * L + L - 1:b * L + L, :] for b in range(B_blk)]
    t_last = rows[0] if B_blk == 1 else jnp.concatenate(rows, axis=0)  # (B_blk, C)

    dense = jnp.dot(t_last, fwt_ref[...], preferred_element_type=jnp.float32)
    if with_stats:
        s = s_ref[...]
        if stablize:
            s = jnp.tanh(s)
        dense = dense + jnp.dot(s, fws_ref[...],
                                preferred_element_type=jnp.float32)
    dense = dense + fb_ref[...]

    if act_fn == "ReLU":
        h = jnp.maximum(dense, 0.0)
    elif act_fn == "Sigmoid":
        h = jax.nn.sigmoid(dense)
    elif act_fn == "Tanh":
        h = jnp.tanh(dense)
    elif act_fn == "ELU":
        h = jnp.where(dense > 0, dense, jnp.expm1(dense))
    else:
        raise ValueError("Unprogrammed Activation Function !")
    if stablize:
        h = jnp.tanh(h)

    out = jnp.dot(h, ow_ref[...], preferred_element_type=jnp.float32) + ob_ref[...]
    if add_target:
        out = out + target
    o_ref[...] = out.astype(o_ref.dtype)


# ---------------------------------------------------------------------------
# Wrapper: lane-dense padding / weight packing + single pallas_call
# ---------------------------------------------------------------------------
def tcn_regr_forward(params, batch, seq_lengths, statistics, *,
                     kernel_size, act_fn, stablize, with_stats, set_target,
                     target, batch_block=None):
    del seq_lengths  # the reference PyTorch forward never uses it
    B, L, Cin = batch.shape
    blocks = params["blocks"]
    num_levels = len(blocks)
    H = blocks[0]["w1"].shape[2]
    LH = params["fc_w"].shape[1]

    C = _round_up(max(Cin, H), _LANE)     # one padded channel width everywhere
    LHp = _round_up(LH, _LANE)
    OUTP = _LANE

    # ---- layout plumbing (plain JAX, once per call) ----
    x = jnp.flip(batch, axis=1)           # batch.flip(1); stays channel-last
    x = _pad_to(x.astype(jnp.float32), (B, L, C)).reshape(B * L, C)
    t_idx = jnp.tile(jnp.arange(L, dtype=jnp.int32), B).reshape(B * L, 1)

    w1s = jnp.stack([_pack_conv(b["w1"].astype(jnp.float32), C) for b in blocks])
    b1s = jnp.stack([_pad_to(b["b1"].astype(jnp.float32), (1, C)) for b in blocks])
    w2s = jnp.stack([_pack_conv(b["w2"].astype(jnp.float32), C) for b in blocks])
    b2s = jnp.stack([_pad_to(b["b2"].astype(jnp.float32), (1, C)) for b in blocks])

    has_downsample = blocks[0]["w1"].shape[1] != blocks[0]["w1"].shape[2]

    fc_w = params["fc_w"].astype(jnp.float32)
    fwt = _pad_to(fc_w[:H], (C, LHp))
    fb = _pad_to(params["fc_b"].astype(jnp.float32), (1, LHp))
    ow = _pad_to(params["out_w"].astype(jnp.float32), (LHp, OUTP))
    ob = _pad_to(params["out_b"].astype(jnp.float32), (1, OUTP))

    # ---- optional batch blocking (keeps a parallel grid axis for v7x) ----
    if batch_block is None or batch_block >= B:
        B_blk = B
    elif B % batch_block == 0 and batch_block % 8 == 0:
        B_blk = batch_block
    else:
        B_blk = B
    n_blocks = B // B_blk

    max_off = (kernel_size - 1) * (2 ** (num_levels - 1))
    pad = _round_up(max_off, 8) if max_off > 0 else 0

    inputs = [t_idx, x, w1s, b1s, w2s, b2s]
    in_specs = [
        pl.BlockSpec((B_blk * L, 1), lambda b: (b, 0)),
        pl.BlockSpec((B_blk * L, C), lambda b: (b, 0)),
        pl.BlockSpec(w1s.shape, lambda b: (0, 0, 0)),
        pl.BlockSpec(b1s.shape, lambda b: (0, 0, 0)),
        pl.BlockSpec(w2s.shape, lambda b: (0, 0, 0)),
        pl.BlockSpec(b2s.shape, lambda b: (0, 0, 0)),
    ]
    if has_downsample:
        wd = _pad_to(blocks[0]["wd"].astype(jnp.float32), (C, C))
        bd = _pad_to(blocks[0]["bd"].astype(jnp.float32), (1, C))
        inputs += [wd, bd]
        in_specs += [pl.BlockSpec(wd.shape, lambda b: (0, 0)),
                     pl.BlockSpec(bd.shape, lambda b: (0, 0))]
    if with_stats:
        stats = statistics.reshape(B, -1).astype(jnp.float32)
        Sp = _round_up(max(stats.shape[1], 1), _LANE)
        stats_p = _pad_to(stats, (B, Sp))
        fws = _pad_to(fc_w[H:], (Sp, LHp))
        inputs += [stats_p, fws]
        in_specs += [pl.BlockSpec((B_blk, Sp), lambda b: (b, 0)),
                     pl.BlockSpec(fws.shape, lambda b: (0, 0))]
    inputs += [fwt, fb, ow, ob]
    in_specs += [pl.BlockSpec(fwt.shape, lambda b: (0, 0)),
                 pl.BlockSpec(fb.shape, lambda b: (0, 0)),
                 pl.BlockSpec(ow.shape, lambda b: (0, 0)),
                 pl.BlockSpec(ob.shape, lambda b: (0, 0))]

    kern = functools.partial(
        fused_tcn_kernel,
        num_levels=num_levels, kernel_size=kernel_size, L=L, B_blk=B_blk,
        pad=pad, has_downsample=has_downsample, with_stats=with_stats,
        stablize=stablize, act_fn=act_fn,
        add_target=(set_target == "add"), target=float(target))

    out_full = pl.pallas_call(
        kern,
        out_shape=jax.ShapeDtypeStruct((B, OUTP), jnp.float32),
        grid=(n_blocks,),
        in_specs=in_specs,
        out_specs=pl.BlockSpec((B_blk, OUTP), lambda b: (b, 0)),
        scratch_shapes=[pltpu.VMEM((pad + B_blk * L, C), jnp.float32)],
        compiler_params=pltpu.CompilerParams(dimension_semantics=("parallel",)),
    )(*inputs)
    return out_full[:, :1]


# ---------------------------------------------------------------------------
# Pure-JAX reference for correctness checking
# ---------------------------------------------------------------------------
def tcn_regr_ref(params, batch, statistics, *, kernel_size, act_fn, stablize,
                 with_stats, set_target, target):
    x = jnp.flip(batch, axis=1)
    for i, blk in enumerate(params["blocks"]):
        d = 2 ** i

        def conv(inp, w, b, d=d):
            L = inp.shape[1]
            acc = jnp.zeros((inp.shape[0], L, w.shape[2]), jnp.float32)
            for k in range(kernel_size):
                off = (kernel_size - 1 - k) * d
                xs = inp if off == 0 else jnp.pad(inp, ((0, 0), (off, 0), (0, 0)))[:, :L, :]
                acc = acc + jnp.einsum("blc,cd->bld", xs, w[k])
            return acc + b

        o1 = jax.nn.relu(conv(x, blk["w1"], blk["b1"]))
        o2 = jax.nn.relu(conv(o1, blk["w2"], blk["b2"]))
        if blk["has_downsample"]:
            res = jnp.einsum("blc,cd->bld", x, blk["wd"]) + blk["bd"]
        else:
            res = x
        x = jax.nn.relu(o2 + res)
    t = x[:, -1, :]
    s = statistics.reshape(statistics.shape[0], -1)
    if with_stats:
        if stablize:
            s = jnp.tanh(s)
        hidden = jnp.concatenate([t, s], axis=1)
    else:
        hidden = t
    dense = hidden @ params["fc_w"] + params["fc_b"]
    if act_fn == "ReLU":
        a = jax.nn.relu(dense)
    elif act_fn == "Sigmoid":
        a = jax.nn.sigmoid(dense)
    elif act_fn == "Tanh":
        a = jnp.tanh(dense)
    elif act_fn == "ELU":
        a = jnp.where(dense > 0, dense, jnp.expm1(dense))
    if stablize:
        a = jnp.tanh(a)
    out = a @ params["out_w"] + params["out_b"]
    if set_target == "add":
        out = out + target
    return out


# ---------------------------------------------------------------------------
# Deterministic parameter init (mirrors shapes of the PyTorch module)
# ---------------------------------------------------------------------------
def init_params(key, *, input_size, hidden_size, num_levels, kernel_size,
                stats_size, last_hidden, bias_init, set_target):
    params = {"blocks": []}
    for i in range(num_levels):
        cin = input_size if i == 0 else hidden_size
        cout = hidden_size
        key, k1, k2, k3, k4, k5, k6 = jax.random.split(key, 7)
        bnd1 = 1.0 / math.sqrt(cin * kernel_size)
        bnd2 = 1.0 / math.sqrt(cout * kernel_size)
        blk = {
            "w1": jax.random.uniform(k1, (kernel_size, cin, cout), jnp.float32, -bnd1, bnd1),
            "b1": jax.random.uniform(k2, (1, cout), jnp.float32, -bnd1, bnd1),
            "w2": jax.random.uniform(k3, (kernel_size, cout, cout), jnp.float32, -bnd2, bnd2),
            "b2": jax.random.uniform(k4, (1, cout), jnp.float32, -bnd2, bnd2),
            "has_downsample": cin != cout,
        }
        if cin != cout:
            bndd = 1.0 / math.sqrt(cin)
            blk["wd"] = jax.random.uniform(k5, (cin, cout), jnp.float32, -bndd, bndd)
            blk["bd"] = jax.random.uniform(k6, (1, cout), jnp.float32, -bndd, bndd)
        else:
            blk["wd"] = jnp.zeros((cin, cout), jnp.float32)   # unused dummy
            blk["bd"] = jnp.zeros((1, cout), jnp.float32)     # unused dummy
        params["blocks"].append(blk)

    key, kf1, kf2, ko1 = jax.random.split(key, 4)
    fc_in = hidden_size + stats_size
    params["fc_w"] = 0.01 * jax.random.normal(kf1, (fc_in, last_hidden), jnp.float32)
    bndf = 1.0 / math.sqrt(fc_in)
    params["fc_b"] = jax.random.uniform(kf2, (1, last_hidden), jnp.float32, -bndf, bndf)
    bndo = 1.0 / math.sqrt(last_hidden)
    params["out_w"] = jax.random.uniform(ko1, (last_hidden, 1), jnp.float32, -bndo, bndo)
    if set_target == "bias":
        params["out_b"] = jnp.full((1, 1), bias_init, jnp.float32)
    else:
        params["out_b"] = jax.random.uniform(key, (1, 1), jnp.float32, -bndo, bndo)
    return params


# ---------------------------------------------------------------------------
if __name__ == "__main__":
    B, L = 2, 16
    input_size, hidden_size, num_levels, kernel_size = 4, 32, 2, 3
    stats_size, last_hidden = 8, 16
    act_fn, stablize = "ReLU", True
    bias_init, set_target = 90.0, "bias"

    key = jax.random.PRNGKey(0)
    kx, ks, kp = jax.random.split(key, 3)
    batch = jax.random.normal(kx, (B, L, input_size), jnp.float32)   # (B, seq, feat)
    seq_lengths = jnp.full((B,), L, jnp.int32)                       # unused in forward
    statistics = jax.random.normal(ks, (B, stats_size), jnp.float32)

    params = init_params(kp, input_size=input_size, hidden_size=hidden_size,
                         num_levels=num_levels, kernel_size=kernel_size,
                         stats_size=stats_size, last_hidden=last_hidden,
                         bias_init=bias_init, set_target=set_target)

    out = tcn_regr_forward(params, batch, seq_lengths, statistics,
                           kernel_size=kernel_size, act_fn=act_fn,
                           stablize=stablize, with_stats=stats_size > 0,
                           set_target=set_target, target=bias_init)
    out = jax.block_until_ready(out)

    ref = tcn_regr_ref(params, batch, statistics,
                       kernel_size=kernel_size, act_fn=act_fn,
                       stablize=stablize, with_stats=stats_size > 0,
                       set_target=set_target, target=bias_init)
    assert out.shape == (B, 1)
    assert jnp.allclose(out, ref, rtol=1e-4, atol=1e-4), (out, ref)
    print("KERNEL_OK")
</pallas_src>

<mosaic_0001>
module attributes {stable_mosaic.version = 11 : i64} {
  func.func @fused_tcn_kernel(%arg0: i32, %arg1: memref<32x1xi32, #tpu.memory_space<vmem>>, %arg2: memref<32x128xf32, #tpu.memory_space<vmem>>, %arg3: memref<2x384x128xf32, #tpu.memory_space<vmem>>, %arg4: memref<2x1x128xf32, #tpu.memory_space<vmem>>, %arg5: memref<2x384x128xf32, #tpu.memory_space<vmem>>, %arg6: memref<2x1x128xf32, #tpu.memory_space<vmem>>, %arg7: memref<128x128xf32, #tpu.memory_space<vmem>>, %arg8: memref<1x128xf32, #tpu.memory_space<vmem>>, %arg9: memref<2x128xf32, #tpu.memory_space<vmem>>, %arg10: memref<128x128xf32, #tpu.memory_space<vmem>>, %arg11: memref<128x128xf32, #tpu.memory_space<vmem>>, %arg12: memref<1x128xf32, #tpu.memory_space<vmem>>, %arg13: memref<128x128xf32, #tpu.memory_space<vmem>>, %arg14: memref<1x128xf32, #tpu.memory_space<vmem>>, %arg15: memref<2x128xf32, #tpu.memory_space<vmem>>, %arg16: memref<40x128xf32, #tpu.memory_space<vmem>>) attributes {dimension_semantics = [#tpu.dimension_semantics<parallel>], iteration_bounds = array<i64: 1>, scalar_prefetch = 0 : i64, scratch_operands = 1 : i64, tpu.core_type = #tpu.core_type<tc>, window_params = [{transform_indices = @transform_0, window_bounds = array<i64: 32, 1>}, {transform_indices = @transform_1, window_bounds = array<i64: 32, 128>}, {pipeline_mode = #tpu.pipeline_mode<synchronous>, transform_indices = @transform_2, window_bounds = array<i64: 2, 384, 128>}, {pipeline_mode = #tpu.pipeline_mode<synchronous>, transform_indices = @transform_3, window_bounds = array<i64: 2, 1, 128>}, {pipeline_mode = #tpu.pipeline_mode<synchronous>, transform_indices = @transform_4, window_bounds = array<i64: 2, 384, 128>}, {pipeline_mode = #tpu.pipeline_mode<synchronous>, transform_indices = @transform_5, window_bounds = array<i64: 2, 1, 128>}, {pipeline_mode = #tpu.pipeline_mode<synchronous>, transform_indices = @transform_6, window_bounds = array<i64: 128, 128>}, {pipeline_mode = #tpu.pipeline_mode<synchronous>, transform_indices = @transform_7, window_bounds = array<i64: 1, 128>}, {transform_indices = @transform_8, window_bounds = array<i64: 2, 128>}, {pipeline_mode = #tpu.pipeline_mode<synchronous>, transform_indices = @transform_9, window_bounds = array<i64: 128, 128>}, {pipeline_mode = #tpu.pipeline_mode<synchronous>, transform_indices = @transform_10, window_bounds = array<i64: 128, 128>}, {pipeline_mode = #tpu.pipeline_mode<synchronous>, transform_indices = @transform_11, window_bounds = array<i64: 1, 128>}, {pipeline_mode = #tpu.pipeline_mode<synchronous>, transform_indices = @transform_12, window_bounds = array<i64: 128, 128>}, {pipeline_mode = #tpu.pipeline_mode<synchronous>, transform_indices = @transform_13, window_bounds = array<i64: 1, 128>}, {transform_indices = @transform_14, window_bounds = array<i64: 2, 128>}]} {
    %c0 = arith.constant 0 : index
    %c0_0 = arith.constant 0 : index
    %0 = vector.load %arg1[%c0, %c0_0] : memref<32x1xi32, #tpu.memory_space<vmem>>, vector<32x1xi32>
    %cst = arith.constant 0.000000e+00 : f32
    %1 = vector.broadcast %cst : f32 to vector<8x128xf32>
    %c0_1 = arith.constant 0 : index
    %c0_2 = arith.constant 0 : index
    %2 = vector.load %arg16[%c0_1, %c0_2] : memref<40x128xf32, #tpu.memory_space<vmem>>, vector<8x128xf32>
    tpu.vector_store %arg16[%c0_1, %c0_2], %1 {strides = array<i32>} : memref<40x128xf32, #tpu.memory_space<vmem>>, vector<8x128xf32>,
    %c0_3 = arith.constant 0 : index
    %c0_4 = arith.constant 0 : index
    %3 = vector.load %arg2[%c0_3, %c0_4] : memref<32x128xf32, #tpu.memory_space<vmem>>, vector<32x128xf32>
    %c0_5 = arith.constant 0 : index
    %c0_6 = arith.constant 0 : index
    %c0_7 = arith.constant 0 : index
    %4 = vector.load %arg3[%c0_5, %c0_6, %c0_7] : memref<2x384x128xf32, #tpu.memory_space<vmem>>, vector<1x384x128xf32>
    %5 = vector.shape_cast %4 : vector<1x384x128xf32> to vector<384x128xf32>
    %c0_8 = arith.constant 0 : index
    %c0_9 = arith.constant 0 : index
    %c0_10 = arith.constant 0 : index
    %6 = vector.load %arg4[%c0_8, %c0_9, %c0_10] : memref<2x1x128xf32, #tpu.memory_space<vmem>>, vector<1x1x128xf32>
    %7 = vector.shape_cast %6 : vector<1x1x128xf32> to vector<1x128xf32>
    %c0_11 = arith.constant 0 : index
    %c0_12 = arith.constant 0 : index
    %c0_13 = arith.constant 0 : index
    %8 = vector.load %arg5[%c0_11, %c0_12, %c0_13] : memref<2x384x128xf32, #tpu.memory_space<vmem>>, vector<1x384x128xf32>
    %9 = vector.shape_cast %8 : vector<1x384x128xf32> to vector<384x128xf32>
    %c0_14 = arith.constant 0 : index
    %c0_15 = arith.constant 0 : index
    %c0_16 = arith.constant 0 : index
    %10 = vector.load %arg6[%c0_14, %c0_15, %c0_16] : memref<2x1x128xf32, #tpu.memory_space<vmem>>, vector<1x1x128xf32>
    %11 = vector.shape_cast %10 : vector<1x1x128xf32> to vector<1x128xf32>
    %c8 = arith.constant 8 : index
    %c0_17 = arith.constant 0 : index
    %12 = vector.load %arg16[%c8, %c0_17] : memref<40x128xf32, #tpu.memory_space<vmem>>, vector<32x128xf32>
    tpu.vector_store %arg16[%c8, %c0_17], %3 {strides = array<i32>} : memref<40x128xf32, #tpu.memory_space<vmem>>, vector<32x128xf32>,
    %c6 = arith.constant 6 : index
    %c0_18 = arith.constant 0 : index
    %13 = vector.load %arg16[%c6, %c0_18] : memref<40x128xf32, #tpu.memory_space<vmem>>, vector<32x128xf32>
    %c2_i32 = arith.constant 2 : i32
    %14 = vector.broadcast %c2_i32 : i32 to vector<32x1xi32>
    %15 = arith.cmpi sge, %0, %14 : vector<32x1xi32>
    %cst_19 = arith.constant 0.000000e+00 : f32
    %16 = vector.shape_cast %15 : vector<32x1xi1> to vector<32x1xi1>
    %17 = vector.broadcast %16 : vector<32x1xi1> to vector<32x128xi1>
    %18 = vector.broadcast %cst_19 : f32 to vector<32x128xf32>
    %19 = arith.select %17, %13, %18 : vector<32x128xi1>, vector<32x128xf32>
    %c7 = arith.constant 7 : index
    %c0_20 = arith.constant 0 : index
    %20 = vector.load %arg16[%c7, %c0_20] : memref<40x128xf32, #tpu.memory_space<vmem>>, vector<32x128xf32>
    %c1_i32 = arith.constant 1 : i32
    %21 = vector.broadcast %c1_i32 : i32 to vector<32x1xi32>
    %22 = arith.cmpi sge, %0, %21 : vector<32x1xi32>
    %cst_21 = arith.constant 0.000000e+00 : f32
    %23 = vector.shape_cast %22 : vector<32x1xi1> to vector<32x1xi1>
    %24 = vector.broadcast %23 : vector<32x1xi1> to vector<32x128xi1>
    %25 = vector.broadcast %cst_21 : f32 to vector<32x128xf32>
    %26 = arith.select %24, %20, %25 : vector<32x128xi1>, vector<32x128xf32>
    %27 = tpu.concatenate %19, %26, %3 in 1 : vector<32x128xf32>, vector<32x128xf32>, vector<32x128xf32> -> vector<32x384xf32>
    %cst_22 = arith.constant dense<0.000000e+00> : vector<32x128xf32>
    %28 = tpu.matmul %27, %5, %cst_22 {dimension_numbers = #tpu.dot_dimension_numbers<[1], [0], [0], [1], [0, 0, 1, 1], [], []>} : vector<32x384xf32>, vector<384x128xf32>, vector<32x128xf32> -> vector<32x128xf32>
    %29 = vector.broadcast %7 : vector<1x128xf32> to vector<32x128xf32>
    %30 = arith.addf %28, %29 : vector<32x128xf32>
    %cst_23 = arith.constant 0.000000e+00 : f32
    %31 = vector.broadcast %cst_23 : f32 to vector<32x128xf32>
    %32 = arith.maximumf %30, %31 : vector<32x128xf32>
    %c8_24 = arith.constant 8 : index
    %c0_25 = arith.constant 0 : index
    %33 = vector.load %arg16[%c8_24, %c0_25] : memref<40x128xf32, #tpu.memory_space<vmem>>, vector<32x128xf32>
    tpu.vector_store %arg16[%c8_24, %c0_25], %32 {strides = array<i32>} : memref<40x128xf32, #tpu.memory_space<vmem>>, vector<32x128xf32>,
    %c6_26 = arith.constant 6 : index
    %c0_27 = arith.constant 0 : index
    %34 = vector.load %arg16[%c6_26, %c0_27] : memref<40x128xf32, #tpu.memory_space<vmem>>, vector<32x128xf32>
    %c2_i32_28 = arith.constant 2 : i32
    %35 = vector.broadcast %c2_i32_28 : i32 to vector<32x1xi32>
    %36 = arith.cmpi sge, %0, %35 : vector<32x1xi32>
    %cst_29 = arith.constant 0.000000e+00 : f32
    %37 = vector.shape_cast %36 : vector<32x1xi1> to vector<32x1xi1>
    %38 = vector.broadcast %37 : vector<32x1xi1> to vector<32x128xi1>
    %39 = vector.broadcast %cst_29 : f32 to vector<32x128xf32>
    %40 = arith.select %38, %34, %39 : vector<32x128xi1>, vector<32x128xf32>
    %c7_30 = arith.constant 7 : index
    %c0_31 = arith.constant 0 : index
    %41 = vector.load %arg16[%c7_30, %c0_31] : memref<40x128xf32, #tpu.memory_space<vmem>>, vector<32x128xf32>
    %c1_i32_32 = arith.constant 1 : i32
    %42 = vector.broadcast %c1_i32_32 : i32 to vector<32x1xi32>
    %43 = arith.cmpi sge, %0, %42 : vector<32x1xi32>
    %cst_33 = arith.constant 0.000000e+00 : f32
    %44 = vector.shape_cast %43 : vector<32x1xi1> to vector<32x1xi1>
    %45 = vector.broadcast %44 : vector<32x1xi1> to vector<32x128xi1>
    %46 = vector.broadcast %cst_33 : f32 to vector<32x128xf32>
    %47 = arith.select %45, %41, %46 : vector<32x128xi1>, vector<32x128xf32>
    %48 = tpu.concatenate %40, %47, %32 in 1 : vector<32x128xf32>, vector<32x128xf32>, vector<32x128xf32> -> vector<32x384xf32>
    %cst_34 = arith.constant dense<0.000000e+00> : vector<32x128xf32>
    %49 = tpu.matmul %48, %9, %cst_34 {dimension_numbers = #tpu.dot_dimension_numbers<[1], [0], [0], [1], [0, 0, 1, 1], [], []>} : vector<32x384xf32>, vector<384x128xf32>, vector<32x128xf32> -> vector<32x128xf32>
    %50 = vector.broadcast %11 : vector<1x128xf32> to vector<32x128xf32>
    %51 = arith.addf %49, %50 : vector<32x128xf32>
    %cst_35 = arith.constant 0.000000e+00 : f32
    %52 = vector.broadcast %cst_35 : f32 to vector<32x128xf32>
    %53 = arith.maximumf %51, %52 : vector<32x128xf32>
    %c0_36 = arith.constant 0 : index
    %c0_37 = arith.constant 0 : index
    %54 = vector.load %arg7[%c0_36, %c0_37] : memref<128x128xf32, #tpu.memory_space<vmem>>, vector<128x128xf32>
    %cst_38 = arith.constant dense<0.000000e+00> : vector<32x128xf32>
    %55 = tpu.matmul %3, %54, %cst_38 {dimension_numbers = #tpu.dot_dimension_numbers<[1], [0], [0], [1], [0, 0, 1, 1], [], []>} : vector<32x128xf32>, vector<128x128xf32>, vector<32x128xf32> -> vector<32x128xf32>
    %c0_39 = arith.constant 0 : index
    %c0_40 = arith.constant 0 : index
    %56 = vector.load %arg8[%c0_39, %c0_40] : memref<1x128xf32, #tpu.memory_space<vmem>>, vector<1x128xf32>
    %57 = vector.broadcast %56 : vector<1x128xf32> to vector<32x128xf32>
    %58 = arith.addf %55, %57 : vector<32x128xf32>
    %59 = arith.addf %53, %58 : vector<32x128xf32>
    %cst_41 = arith.constant 0.000000e+00 : f32
    %60 = vector.broadcast %cst_41 : f32 to vector<32x128xf32>
    %61 = arith.maximumf %59, %60 : vector<32x128xf32>
    %c1 = arith.constant 1 : index
    %c0_42 = arith.constant 0 : index
    %c0_43 = arith.constant 0 : index
    %62 = vector.load %arg3[%c1, %c0_42, %c0_43] : memref<2x384x128xf32, #tpu.memory_space<vmem>>, vector<1x384x128xf32>
    %63 = vector.shape_cast %62 : vector<1x384x128xf32> to vector<384x128xf32>
    %c1_44 = arith.constant 1 : index
    %c0_45 = arith.constant 0 : index
    %c0_46 = arith.constant 0 : index
    %64 = vector.load %arg4[%c1_44, %c0_45, %c0_46] : memref<2x1x128xf32, #tpu.memory_space<vmem>>, vector<1x1x128xf32>
    %65 = vector.shape_cast %64 : vector<1x1x128xf32> to vector<1x128xf32>
    %c1_47 = arith.constant 1 : index
    %c0_48 = arith.constant 0 : index
    %c0_49 = arith.constant 0 : index
    %66 = vector.load %arg5[%c1_47, %c0_48, %c0_49] : memref<2x384x128xf32, #tpu.memory_space<vmem>>, vector<1x384x128xf32>
    %67 = vector.shape_cast %66 : vector<1x384x128xf32> to vector<384x128xf32>
    %c1_50 = arith.constant 1 : index
    %c0_51 = arith.constant 0 : index
    %c0_52 = arith.constant 0 : index
    %68 = vector.load %arg6[%c1_50, %c0_51, %c0_52] : memref<2x1x128xf32, #tpu.memory_space<vmem>>, vector<1x1x128xf32>
    %69 = vector.shape_cast %68 : vector<1x1x128xf32> to vector<1x128xf32>
    %c8_53 = arith.constant 8 : index
    %c0_54 = arith.constant 0 : index
    %70 = vector.load %arg16[%c8_53, %c0_54] : memref<40x128xf32, #tpu.memory_space<vmem>>, vector<32x128xf32>
    tpu.vector_store %arg16[%c8_53, %c0_54], %61 {strides = array<i32>} : memref<40x128xf32, #tpu.memory_space<vmem>>, vector<32x128xf32>,
    %c4 = arith.constant 4 : index
    %c0_55 = arith.constant 0 : index
    %71 = vector.load %arg16[%c4, %c0_55] : memref<40x128xf32, #tpu.memory_space<vmem>>, vector<32x128xf32>
    %c4_i32 = arith.constant 4 : i32
    %72 = vector.broadcast %c4_i32 : i32 to vector<32x1xi32>
    %73 = arith.cmpi sge, %0, %72 : vector<32x1xi32>
    %cst_56 = arith.constant 0.000000e+00 : f32
    %74 = vector.shape_cast %73 : vector<32x1xi1> to vector<32x1xi1>
    %75 = vector.broadcast %74 : vector<32x1xi1> to vector<32x128xi1>
    %76 = vector.broadcast %cst_56 : f32 to vector<32x128xf32>
    %77 = arith.select %75, %71, %76 : vector<32x128xi1>, vector<32x128xf32>
    %c6_57 = arith.constant 6 : index
    %c0_58 = arith.constant 0 : index
    %78 = vector.load %arg16[%c6_57, %c0_58] : memref<40x128xf32, #tpu.memory_space<vmem>>, vector<32x128xf32>
    %c2_i32_59 = arith.constant 2 : i32
    %79 = vector.broadcast %c2_i32_59 : i32 to vector<32x1xi32>
    %80 = arith.cmpi sge, %0, %79 : vector<32x1xi32>
    %cst_60 = arith.constant 0.000000e+00 : f32
    %81 = vector.shape_cast %80 : vector<32x1xi1> to vector<32x1xi1>
    %82 = vector.broadcast %81 : vector<32x1xi1> to vector<32x128xi1>
    %83 = vector.broadcast %cst_60 : f32 to vector<32x128xf32>
    %84 = arith.select %82, %78, %83 : vector<32x128xi1>, vector<32x128xf32>
    %85 = tpu.concatenate %77, %84, %61 in 1 : vector<32x128xf32>, vector<32x128xf32>, vector<32x128xf32> -> vector<32x384xf32>
    %cst_61 = arith.constant dense<0.000000e+00> : vector<32x128xf32>
    %86 = tpu.matmul %85, %63, %cst_61 {dimension_numbers = #tpu.dot_dimension_numbers<[1], [0], [0], [1], [0, 0, 1, 1], [], []>} : vector<32x384xf32>, vector<384x128xf32>, vector<32x128xf32> -> vector<32x128xf32>
    %87 = vector.broadcast %65 : vector<1x128xf32> to vector<32x128xf32>
    %88 = arith.addf %86, %87 : vector<32x128xf32>
    %cst_62 = arith.constant 0.000000e+00 : f32
    %89 = vector.broadcast %cst_62 : f32 to vector<32x128xf32>
    %90 = arith.maximumf %88, %89 : vector<32x128xf32>
    %c8_63 = arith.constant 8 : index
    %c0_64 = arith.constant 0 : index
    %91 = vector.load %arg16[%c8_63, %c0_64] : memref<40x128xf32, #tpu.memory_space<vmem>>, vector<32x128xf32>
    tpu.vector_store %arg16[%c8_63, %c0_64], %90 {strides = array<i32>} : memref<40x128xf32, #tpu.memory_space<vmem>>, vector<32x128xf32>,
    %c4_65 = arith.constant 4 : index
    %c0_66 = arith.constant 0 : index
    %92 = vector.load %arg16[%c4_65, %c0_66] : memref<40x128xf32, #tpu.memory_space<vmem>>, vector<32x128xf32>
    %c4_i32_67 = arith.constant 4 : i32
    %93 = vector.broadcast %c4_i32_67 : i32 to vector<32x1xi32>
    %94 = arith.cmpi sge, %0, %93 : vector<32x1xi32>
    %cst_68 = arith.constant 0.000000e+00 : f32
    %95 = vector.shape_cast %94 : vector<32x1xi1> to vector<32x1xi1>
    %96 = vector.broadcast %95 : vector<32x1xi1> to vector<32x128xi1>
    %97 = vector.broadcast %cst_68 : f32 to vector<32x128xf32>
    %98 = arith.select %96, %92, %97 : vector<32x128xi1>, vector<32x128xf32>
    %c6_69 = arith.constant 6 : index
    %c0_70 = arith.constant 0 : index
    %99 = vector.load %arg16[%c6_69, %c0_70] : memref<40x128xf32, #tpu.memory_space<vmem>>, vector<32x128xf32>
    %c2_i32_71 = arith.constant 2 : i32
    %100 = vector.broadcast %c2_i32_71 : i32 to vector<32x1xi32>
    %101 = arith.cmpi sge, %0, %100 : vector<32x1xi32>
    %cst_72 = arith.constant 0.000000e+00 : f32
    %102 = vector.shape_cast %101 : vector<32x1xi1> to vector<32x1xi1>
    %103 = vector.broadcast %102 : vector<32x1xi1> to vector<32x128xi1>
    %104 = vector.broadcast %cst_72 : f32 to vector<32x128xf32>
    %105 = arith.select %103, %99, %104 : vector<32x128xi1>, vector<32x128xf32>
    %106 = tpu.concatenate %98, %105, %90 in 1 : vector<32x128xf32>, vector<32x128xf32>, vector<32x128xf32> -> vector<32x384xf32>
    %cst_73 = arith.constant dense<0.000000e+00> : vector<32x128xf32>
    %107 = tpu.matmul %106, %67, %cst_73 {dimension_numbers = #tpu.dot_dimension_numbers<[1], [0], [0], [1], [0, 0, 1, 1], [], []>} : vector<32x384xf32>, vector<384x128xf32>, vector<32x128xf32> -> vector<32x128xf32>
    %108 = vector.broadcast %69 : vector<1x128xf32> to vector<32x128xf32>
    %109 = arith.addf %107, %108 : vector<32x128xf32>
    %cst_74 = arith.constant 0.000000e+00 : f32
    %110 = vector.broadcast %cst_74 : f32 to vector<32x128xf32>
    %111 = arith.maximumf %109, %110 : vector<32x128xf32>
    %112 = arith.addf %111, %61 : vector<32x128xf32>
    %cst_75 = arith.constant 0.000000e+00 : f32
    %113 = vector.broadcast %cst_75 : f32 to vector<32x128xf32>
    %114 = arith.maximumf %112, %113 : vector<32x128xf32>
    %115 = vector.extract_strided_slice %114 {offsets = [15, 0], sizes = [1, 128], strides = [1, 1]} : vector<32x128xf32> to vector<1x128xf32>
    %116 = vector.extract_strided_slice %114 {offsets = [31, 0], sizes = [1, 128], strides = [1, 1]} : vector<32x128xf32> to vector<1x128xf32>
    %117 = tpu.concatenate %115, %116 in 0 : vector<1x128xf32>, vector<1x128xf32> -> vector<2x128xf32>
    %c0_76 = arith.constant 0 : index
    %c0_77 = arith.constant 0 : index
    %118 = vector.load %arg11[%c0_76, %c0_77] : memref<128x128xf32, #tpu.memory_space<vmem>>, vector<128x128xf32>
    %cst_78 = arith.constant dense<0.000000e+00> : vector<2x128xf32>
    %119 = tpu.matmul %117, %118, %cst_78 {dimension_numbers = #tpu.dot_dimension_numbers<[1], [0], [0], [1], [0, 0, 1, 1], [], []>} : vector<2x128xf32>, vector<128x128xf32>, vector<2x128xf32> -> vector<2x128xf32>
    %c0_79 = arith.constant 0 : index
    %c0_80 = arith.constant 0 : index
    %120 = vector.load %arg9[%c0_79, %c0_80] : memref<2x128xf32, #tpu.memory_space<vmem>>, vector<2x128xf32>
    %121 = math.tanh %120 : vector<2x128xf32>
    %c0_81 = arith.constant 0 : index
    %c0_82 = arith.constant 0 : index
    %122 = vector.load %arg10[%c0_81, %c0_82] : memref<128x128xf32, #tpu.memory_space<vmem>>, vector<128x128xf32>
    %cst_83 = arith.constant dense<0.000000e+00> : vector<2x128xf32>
    %123 = tpu.matmul %121, %122, %cst_83 {dimension_numbers = #tpu.dot_dimension_numbers<[1], [0], [0], [1], [0, 0, 1, 1], [], []>} : vector<2x128xf32>, vector<128x128xf32>, vector<2x128xf32> -> vector<2x128xf32>
    %124 = arith.addf %119, %123 : vector<2x128xf32>
    %c0_84 = arith.constant 0 : index
    %c0_85 = arith.constant 0 : index
    %125 = vector.load %arg12[%c0_84, %c0_85] : memref<1x128xf32, #tpu.memory_space<vmem>>, vector<1x128xf32>
    %126 = vector.broadcast %125 : vector<1x128xf32> to vector<2x128xf32>
    %127 = arith.addf %124, %126 : vector<2x128xf32>
    %cst_86 = arith.constant 0.000000e+00 : f32
    %128 = vector.broadcast %cst_86 : f32 to vector<2x128xf32>
    %129 = arith.maximumf %127, %128 : vector<2x128xf32>
    %130 = math.tanh %129 : vector<2x128xf32>
    %c0_87 = arith.constant 0 : index
    %c0_88 = arith.constant 0 : index
    %131 = vector.load %arg13[%c0_87, %c0_88] : memref<128x128xf32, #tpu.memory_space<vmem>>, vector<128x128xf32>
    %cst_89 = arith.constant dense<0.000000e+00> : vector<2x128xf32>
    %132 = tpu.matmul %130, %131, %cst_89 {dimension_numbers = #tpu.dot_dimension_numbers<[1], [0], [0], [1], [0, 0, 1, 1], [], []>} : vector<2x128xf32>, vector<128x128xf32>, vector<2x128xf32> -> vector<2x128xf32>
    %c0_90 = arith.constant 0 : index
    %c0_91 = arith.constant 0 : index
    %133 = vector.load %arg14[%c0_90, %c0_91] : memref<1x128xf32, #tpu.memory_space<vmem>>, vector<1x128xf32>
    %134 = vector.broadcast %133 : vector<1x128xf32> to vector<2x128xf32>
    %135 = arith.addf %132, %134 : vector<2x128xf32>
    %c0_92 = arith.constant 0 : index
    %c0_93 = arith.constant 0 : index
    %136 = vector.load %arg15[%c0_92, %c0_93] : memref<2x128xf32, #tpu.memory_space<vmem>>, vector<2x128xf32>
    tpu.vector_store %arg15[%c0_92, %c0_93], %135 {strides = array<i32>} : memref<2x128xf32, #tpu.memory_space<vmem>>, vector<2x128xf32>,
    return
  }
  func.func @transform_0(%arg0: i32) -> (i32, i32) {
    %c0_i32 = arith.constant 0 : i32
    %c0_i32_0 = arith.constant 0 : i32
    return %arg0, %c0_i32 : i32, i32
  }
  func.func @transform_1(%arg0: i32) -> (i32, i32) {
    %c0_i32 = arith.constant 0 : i32
    %c0_i32_0 = arith.constant 0 : i32
    return %arg0, %c0_i32 : i32, i32
  }
  func.func @transform_2(%arg0: i32) -> (i32, i32, i32) {
    %c0_i32 = arith.constant 0 : i32
    %c0_i32_0 = arith.constant 0 : i32
    %c0_i32_1 = arith.constant 0 : i32
    %c0_i32_2 = arith.constant 0 : i32
    return %c0_i32, %c0_i32_0, %c0_i32_1 : i32, i32, i32
  }
  func.func @transform_3(%arg0: i32) -> (i32, i32, i32) {
    %c0_i32 = arith.constant 0 : i32
    %c0_i32_0 = arith.constant 0 : i32
    %c0_i32_1 = arith.constant 0 : i32
    %c0_i32_2 = arith.constant 0 : i32
    return %c0_i32, %c0_i32_0, %c0_i32_1 : i32, i32, i32
  }
  func.func @transform_4(%arg0: i32) -> (i32, i32, i32) {
    %c0_i32 = arith.constant 0 : i32
    %c0_i32_0 = arith.constant 0 : i32
    %c0_i32_1 = arith.constant 0 : i32
    %c0_i32_2 = arith.constant 0 : i32
    return %c0_i32, %c0_i32_0, %c0_i32_1 : i32, i32, i32
  }
  func.func @transform_5(%arg0: i32) -> (i32, i32, i32) {
    %c0_i32 = arith.constant 0 : i32
    %c0_i32_0 = arith.constant 0 : i32
    %c0_i32_1 = arith.constant 0 : i32
    %c0_i32_2 = arith.constant 0 : i32
    return %c0_i32, %c0_i32_0, %c0_i32_1 : i32, i32, i32
  }
  func.func @transform_6(%arg0: i32) -> (i32, i32) {
    %c0_i32 = arith.constant 0 : i32
    %c0_i32_0 = arith.constant 0 : i32
    %c0_i32_1 = arith.constant 0 : i32
    return %c0_i32, %c0_i32_0 : i32, i32
  }
  func.func @transform_7(%arg0: i32) -> (i32, i32) {
    %c0_i32 = arith.constant 0 : i32
    %c0_i32_0 = arith.constant 0 : i32
    %c0_i32_1 = arith.constant 0 : i32
    return %c0_i32, %c0_i32_0 : i32, i32
  }
  func.func @transform_8(%arg0: i32) -> (i32, i32) {
    %c0_i32 = arith.constant 0 : i32
    %c0_i32_0 = arith.constant 0 : i32
    return %arg0, %c0_i32 : i32, i32
  }
  func.func @transform_9(%arg0: i32) -> (i32, i32) {
    %c0_i32 = arith.constant 0 : i32
    %c0_i32_0 = arith.constant 0 : i32
    %c0_i32_1 = arith.constant 0 : i32
    return %c0_i32, %c0_i32_0 : i32, i32
  }
  func.func @transform_10(%arg0: i32) -> (i32, i32) {
    %c0_i32 = arith.constant 0 : i32
    %c0_i32_0 = arith.constant 0 : i32
    %c0_i32_1 = arith.constant 0 : i32
    return %c0_i32, %c0_i32_0 : i32, i32
  }
  func.func @transform_11(%arg0: i32) -> (i32, i32) {
    %c0_i32 = arith.constant 0 : i32
    %c0_i32_0 = arith.constant 0 : i32
    %c0_i32_1 = arith.constant 0 : i32
    return %c0_i32, %c0_i32_0 : i32, i32
  }
  func.func @transform_12(%arg0: i32) -> (i32, i32) {
    %c0_i32 = arith.constant 0 : i32
    %c0_i32_0 = arith.constant 0 : i32
    %c0_i32_1 = arith.constant 0 : i32
    return %c0_i32, %c0_i32_0 : i32, i32
  }
  func.func @transform_13(%arg0: i32) -> (i32, i32) {
    %c0_i32 = arith.constant 0 : i32
    %c0_i32_0 = arith.constant 0 : i32
    %c0_i32_1 = arith.constant 0 : i32
    return %c0_i32, %c0_i32_0 : i32, i32
  }
  func.func @transform_14(%arg0: i32) -> (i32, i32) {
    %c0_i32 = arith.constant 0 : i32
    %c0_i32_0 = arith.constant 0 : i32
    return %arg0, %c0_i32 : i32, i32
  }
}

</mosaic_0001>

<bundles_post_ra>
// kernel: tpu_custom_call.1
= control target key start
LH: loop header
LB: loop body
LE: loop exit
PB: predicated region body
PF: predicated region fallthrough
CT: control target
= control target key end

     0   :  { %19 = vsyncpa [#allocation4], 0  ;;  %s3287_s0 = inlined_call_operand.vmem [shape: s32[32,1], index: 0, kind: input, shape index: {}]   ;;  %s3288_s1 = inlined_call_operand.vmem [shape: f32[32,128], index: 1, kind: input, shape index: {}]   ;;  %s3289_s2 = inlined_call_operand.hbm [shape: f32[2,384,128], index: 2, kind: input, shape index: {}]   ;;  %s3290_s3 = inlined_call_operand.vmem [shape: f32[2,1,128], index: 3, kind: input, shape index: {}]   ;;  %s3291_s4 = inlined_call_operand.hbm [shape: f32[2,384,128], index: 4, kind: input, shape index: {}]   ;;  %s3292_s5 = inlined_call_operand.vmem [shape: f32[2,1,128], index: 5, kind: input, shape index: {}]   ;;  %s3293_s6 = inlined_call_operand.hbm [shape: f32[128,128], index: 6, kind: input, shape index: {}]   ;;  %s3294_s7 = inlined_call_operand.vmem [shape: f32[1,128], index: 7, kind: input, shape index: {}]   ;;  %s3295_s8 = inlined_call_operand.vmem [shape: f32[2,128], index: 8, kind: input, shape index: {}]   ;;  %s3296_s9 = inlined_call_operand.hbm [shape: f32[128,128], index: 9, kind: input, shape index: {}]   ;;  %s3297_s10 = inlined_call_operand.hbm [shape: f32[128,128], index: 10, kind: input, shape index: {}]   ;;  %s3298_s11 = inlined_call_operand.vmem [shape: f32[1,128], index: 11, kind: input, shape index: {}]   ;;  %s3299_s12 = inlined_call_operand.hbm [shape: f32[128,128], index: 12, kind: input, shape index: {}]   ;;  %s3300_s13 = inlined_call_operand.vmem [shape: f32[1,128], index: 13, kind: input, shape index: {}]   ;;  %s3301_s14 = inlined_call_operand.hbm [shape: f32[2,128], index: 14, kind: output, shape index: {}]  }
   0x1   :  { %20 = vsyncpa [#allocation7], 0 }
   0x2   :  { %21 = vsyncpa [#allocation10], 0 }
   0x3   :  { %22 = vsyncpa [#allocation13], 0 }
   0x4   :  { %23 = vsyncpa [#allocation5], 0  ;;  %s2836_s29 = smov [#allocation6]   ;;  %s2837_s15 = smov [#allocation9]  }
   0x5   :  { %s47_s30 = sshll.u32 %s2836_s29, 4  ;;  %s77_s16 = sshll.u32 %s2837_s15, 4  ;;  %s48_s30 = int_to_ptr.vmem [resolvable:$true] %s47_s30  ;;  %s2924_s16 = int_to_ptr.vmem [resolvable:$true] %s77_s16 }
   0x6   :  { %s2672_s19 = scalar_lea.hbm %s3291_s4, 12288 }
   0x7   :  { %p2673_p0 = scmp.ne.s32.totalorder %s3291_s4, %s2672_s19  ;;  %p2676_p1 = scmp.lt.u32.totalorder %s2672_s19, %s3291_s4 }
   0x9   :  { %p2678_p2 = pnand %p2676_p1, %p2673_p0 }
   0xb   :  { %2681 = shalt.err (!%p2678_p2)
}
   0xc   :  { %s2682_s24 = scalar_lea.vmem %s48_s30, 12288  ;;  %p2687_p4 = scmp.lt.s32.totalorder %s48_s30, %s48_s30 }
   0xd   :  { %p2683_p3 = scmp.ne.s32.totalorder %s48_s30, %s2682_s24  ;;  %p2688_p5 = scmp.lt.s32.totalorder %s2682_s24, %s2682_s24 }
   0xf   :  { %p2689_p6 = por %p2688_p5, %p2687_p4 }
  0x11   :  { %p2690_p7 = pnand %p2689_p6, %p2683_p3 }
  0x13   :  { %2693 = shalt.err (!%p2690_p7)
}
  0x14   :  { %s2838_s25 = smov 128   ;;  %s2839_s26 = smov 8  }
  0x15   :  { %53 = dma.hbm_to_vmem [thread:$0]  %s3291_s4, 12288, %s48_s30, [#allocation7], %s2838_s25, %s2838_s25, %s2839_s26  }
  0x16   :  { %s2694_s17 = scalar_lea.hbm %s3296_s9, 2048 }
  0x17   :  { %p2695_p8 = scmp.ne.s32.totalorder %s3296_s9, %s2694_s17  ;;  %p2698_p9 = scmp.lt.u32.totalorder %s2694_s17, %s3296_s9 }
  0x19   :  { %p2700_p10 = pnand %p2698_p9, %p2695_p8 }
  0x1b   :  { %2703 = shalt.err (!%p2700_p10)
}
  0x1c   :  { %s2704_s22 = scalar_lea.vmem %s2924_s16, 2048  ;;  %p2709_p12 = scmp.lt.s32.totalorder %s2924_s16, %s2924_s16 }
  0x1d   :  { %p2705_p11 = scmp.ne.s32.totalorder %s2924_s16, %s2704_s22  ;;  %p2710_p13 = scmp.lt.s32.totalorder %s2704_s22, %s2704_s22 }
  0x1f   :  { %p2711_p0 = por %p2710_p13, %p2709_p12 }
  0x21   :  { %p2712_p1 = pnand %p2711_p0, %p2705_p11 }
  0x23   :  { %2715 = shalt.err (!%p2712_p1)
}
  0x24   :  { %83 = dma.hbm_to_vmem [thread:$0]  %s3296_s9, 2048, %s2924_s16, [#allocation10], %s2838_s25, %s2838_s25, %s2839_s26  }
  0x25   :  { %s2840_s23 = smov [#allocation3]   ;;  %s2841_s27 = smov [#allocation8]  }
  0x26   :  { %s33_s24 = sshll.u32 %s2840_s23, 4  ;;  %s61_s28 = sshll.u32 %s2841_s27, 4  ;;  %s34_s24 = int_to_ptr.vmem [resolvable:$true] %s33_s24  ;;  %s2961_s28 = int_to_ptr.vmem [resolvable:$true] %s61_s28 }
  0x27   :  { %s2716_s17 = scalar_lea.hbm %s3289_s2, 12288 }
  0x28   :  { %p2717_p2 = scmp.ne.s32.totalorder %s3289_s2, %s2716_s17  ;;  %p2720_p3 = scmp.lt.u32.totalorder %s2716_s17, %s3289_s2 }
  0x2a   :  { %p2722_p4 = pnand %p2720_p3, %p2717_p2 }
  0x2c   :  { %2725 = shalt.err (!%p2722_p4)
}
  0x2d   :  { %s2726_s9 = scalar_lea.vmem %s34_s24, 12288  ;;  %p2731_p6 = scmp.lt.s32.totalorder %s34_s24, %s34_s24 }
  0x2e   :  { %p2727_p5 = scmp.ne.s32.totalorder %s34_s24, %s2726_s9  ;;  %p2732_p7 = scmp.lt.s32.totalorder %s2726_s9, %s2726_s9 }
  0x30   :  { %p2733_p8 = por %p2732_p7, %p2731_p6 }
  0x32   :  { %p2734_p9 = pnand %p2733_p8, %p2727_p5 }
  0x34   :  { %2737 = shalt.err (!%p2734_p9)
}
  0x35   :  { %39 = dma.hbm_to_vmem [thread:$0]  %s3289_s2, 12288, %s34_s24, [#allocation4], %s2838_s25, %s2838_s25, %s2839_s26  }
  0x36   :  { %s2738_s23 = scalar_lea.hbm %s3293_s6, 2048 }
  0x37   :  { %p2739_p10 = scmp.ne.s32.totalorder %s3293_s6, %s2738_s23  ;;  %p2742_p11 = scmp.lt.u32.totalorder %s2738_s23, %s3293_s6 }
  0x39   :  { %p2744_p12 = pnand %p2742_p11, %p2739_p10 }
  0x3b   :  { %2747 = shalt.err (!%p2744_p12)
}
  0x3c   :  { %s2748_s18 = scalar_lea.vmem %s2961_s28, 2048  ;;  %p2753_p0 = scmp.lt.s32.totalorder %s2961_s28, %s2961_s28 }
  0x3d   :  { %p2749_p13 = scmp.ne.s32.totalorder %s2961_s28, %s2748_s18  ;;  %p2754_p1 = scmp.lt.s32.totalorder %s2748_s18, %s2748_s18 }
  0x3f   :  { %p2755_p2 = por %p2754_p1, %p2753_p0 }
  0x41   :  { %p2756_p3 = pnand %p2755_p2, %p2749_p13 }
  0x43   :  { %2759 = shalt.err (!%p2756_p3)
}
  0x44   :  { %67 = dma.hbm_to_vmem [thread:$0]  %s3293_s6, 2048, %s2961_s28, [#allocation7], %s2838_s25, %s2838_s25, %s2839_s26  }
  0x45   :  { %s2842_s19 = smov [#allocation11]   ;;  %s2843_s21 = smov [#allocation12]  }
  0x46   :  { %s89_s20 = sshll.u32 %s2842_s19, 4  ;;  %s103_s9 = sshll.u32 %s2843_s21, 4  ;;  %s90_s20 = int_to_ptr.vmem [resolvable:$true] %s89_s20  ;;  %s2998_s9 = int_to_ptr.vmem [resolvable:$true] %s103_s9 }
  0x47   :  { %s2760_s4 = scalar_lea.hbm %s3297_s10, 2048 }
  0x48   :  { %p2761_p4 = scmp.ne.s32.totalorder %s3297_s10, %s2760_s4  ;;  %p2764_p5 = scmp.lt.u32.totalorder %s2760_s4, %s3297_s10 }
  0x4a   :  { %p2766_p6 = pnand %p2764_p5, %p2761_p4 }
  0x4c   :  { %2769 = shalt.err (!%p2766_p6)
}
  0x4d   :  { %s2770_s6 = scalar_lea.vmem %s90_s20, 2048  ;;  %p2775_p8 = scmp.lt.s32.totalorder %s90_s20, %s90_s20 }
  0x4e   :  { %p2771_p7 = scmp.ne.s32.totalorder %s90_s20, %s2770_s6  ;;  %p2776_p9 = scmp.lt.s32.totalorder %s2770_s6, %s2770_s6 }
  0x50   :  { %p2777_p10 = por %p2776_p9, %p2775_p8 }
  0x52   :  { %p2778_p11 = pnand %p2777_p10, %p2771_p7 }
  0x54   :  { %2781 = shalt.err (!%p2778_p11)
}
  0x55   :  { %95 = dma.hbm_to_vmem [thread:$0]  %s3297_s10, 2048, %s90_s20, [#allocation10], %s2838_s25, %s2838_s25, %s2839_s26  }
  0x56   :  { %s2782_s2 = scalar_lea.hbm %s3299_s12, 2048 }
  0x57   :  { %p2783_p12 = scmp.ne.s32.totalorder %s3299_s12, %s2782_s2  ;;  %p2786_p13 = scmp.lt.u32.totalorder %s2782_s2, %s3299_s12 }
  0x59   :  { %p2788_p0 = pnand %p2786_p13, %p2783_p12 }
  0x5b   :  { %2791 = shalt.err (!%p2788_p0)
}
  0x5c   :  { %s2792_s22 = scalar_lea.vmem %s2998_s9, 2048  ;;  %p2797_p2 = scmp.lt.s32.totalorder %s2998_s9, %s2998_s9 }
  0x5d   :  { %p2793_p1 = scmp.ne.s32.totalorder %s2998_s9, %s2792_s22  ;;  %p2798_p3 = scmp.lt.s32.totalorder %s2792_s22, %s2792_s22 }
  0x5f   :  { %p2799_p4 = por %p2798_p3, %p2797_p2 }
  0x61   :  { %p2800_p5 = pnand %p2799_p4, %p2793_p1 }
  0x63   :  { %2803 = shalt.err (!%p2800_p5)
}
  0x64   :  { %109 = dma.hbm_to_vmem [thread:$0]  %s3299_s12, 2048, %s2998_s9, [#allocation13], %s2838_s25, %s2838_s25, %s2839_s26  }
  0x65   :  { %2826 = dma.done.wait [#allocation4], 12288  }
  0x66   :  { %2827 = vsyncadd [#allocation4], 4294955008 }
  0x67   :  { %2828 = dma.done.wait [#allocation7], 14336  }
  0x68   :  { %2829 = vsyncadd [#allocation7], 4294952960 }
  0x69   :  { %2830 = dma.done.wait [#allocation10], 4096  }
  0x6a   :  { %2831 = vsyncadd [#allocation10], 4294963200 }
  0x6b   :  { %2832 = dma.done.wait [#allocation13], 2048  }
  0x6c   :  { %2833 = vsyncadd [#allocation13], 4294965248  ;;  %v2844_v0 = vmov 0   ;;  %v2845_v1 = vmov 0.0   ;;  %v3040_v2 = vld [vmem:[%s3287_s0 + $0x8] sm:$0xff]  ;;  %v3045_v3 = vld [vmem:[%s3287_s0] sm:$0xff] }
  0x6d   :  { %2666 = vset.pattern.permute.xlu1 %v2844_v0  ;;  %2665 = vset.pattern.permute.xlu0 %v2844_v0  ;;  %134 = vst [vmem:[#allocation2] sm:$0xff] %v2845_v1  ;;  %vm278_vm0 = vcmp.ge.s32.totalorder %v3040_v2, 1  ;;  %vm277_vm1 = vcmp.ge.s32.totalorder %v3045_v3, 1  ;;  %vm246_vm2 = vcmp.ge.s32.totalorder %v3040_v2, 2  ;;  %vm245_vm3 = vcmp.ge.s32.totalorder %v3045_v3, 2  ;;  %v3056_v6 = vld [vmem:[%s3287_s0 + $0x10] sm:$0xff] }
  0x6e   :  { %v282_v4 = vsel %vm278_vm0, 1, %v2844_v0  ;;  %v281_v5 = vsel %vm277_vm1, 1, %v2844_v0  ;;  %v155_v7 = vld [vmem:[#allocation3 + $0x80] sm:$0xff]  ;;  %v156_v8 = vld [vmem:[#allocation3 + $0x88] sm:$0xff]  ;;  %v250_v10 = vsel %vm246_vm2, 1, %v2844_v0  ;;  %v249_v11 = vsel %vm245_vm3, 1, %v2844_v0 }
  0x6f   :  { %289 = vperm.xlu1 %2666, %v282_v4   ;;  %286 = vperm.xlu0 %2665, %v281_v5   ;;  %v139_v9 = vld [vmem:[#allocation3] sm:$0xff]  ;;  %v140_v12 = vld [vmem:[#allocation3 + $0x8] sm:$0xff]  ;;  %vm247_vm4 = vcmp.ge.s32.totalorder %v3056_v6, 2  ;;  %vm279_vm5 = vcmp.ge.s32.totalorder %v3056_v6, 1  ;;  %v157_v15 = vld [vmem:[#allocation3 + $0x90] sm:$0xff]  ;;  %v2292_v19 = vpack.c.bf16 %v156_v8, %v155_v7  ;;  %vm912_vm8 = vcmp.ge.s32.totalorder %v3040_v2, 4 }
  0x70   :  { %v171_v13 = vld [vmem:[#allocation3 + $0x100] sm:$0xff]  ;;  %v172_v14 = vld [vmem:[#allocation3 + $0x108] sm:$0xff]  ;;  %v158_v16 = vld [vmem:[#allocation3 + $0x98] sm:$0xff]  ;;  %v2294_v20 = vpack.c.bf16 %v140_v12, %v139_v9  ;;  %v251_v25 = vsel %vm247_vm4, 1, %v2844_v0  ;;  %v283_v26 = vsel %vm279_vm5, 1, %v2844_v0  ;;  %vm911_vm9 = vcmp.ge.s32.totalorder %v3045_v3, 4 }
  0x71   :  { %v3065_v17 = vld [vmem:[%s3287_s0 + $0x18] sm:$0xff]  ;;  %v2324_v21 = vpack.c.bf16 %v172_v14, %v171_v13  ;;  %v142_v23 = vld [vmem:[#allocation3 + $0x18] sm:$0xff]  ;;  %v2296_v27 = vpack.c.bf16 %v158_v16, %v157_v15  ;;  %v159_v29 = vld [vmem:[#allocation3 + $0xa0] sm:$0xff]  ;;  %2293 = vmatprep.subr.bf16.mxu0 %v2292_v19  ;;  %v916_v47 = vsel %vm912_vm8, 1, %v2844_v0  ;;  %v915_v48 = vsel %vm911_vm9, 1, %v2844_v0  ;;  %s2848_s26 = smov [#allocation14]  }
  0x72   :  { %v173_v18 = vld [vmem:[#allocation3 + $0x110] sm:$0xff]  ;;  %v174_v24 = vld [vmem:[#allocation3 + $0x118] sm:$0xff]  ;;  %vm248_vm6 = vcmp.ge.s32.totalorder %v3065_v17, 2  ;;  %vm280_vm7 = vcmp.ge.s32.totalorder %v3065_v17, 1  ;;  %v160_v30 = vld [vmem:[#allocation3 + $0xa8] sm:$0xff]  ;;  %2295 = vmatpush3.bf16.msra.mxu0 %v2294_v20  ;;  %vm914_vm10 = vcmp.ge.s32.totalorder %v3065_v17, 4 }
  0x73   :  { %257 = vperm.xlu1 %2666, %v250_v10   ;;  %254 = vperm.xlu0 %2665, %v249_v11   ;;  %v141_v22 = vld [vmem:[#allocation3 + $0x10] sm:$0xff]  ;;  %v2328_v28 = vpack.c.bf16 %v174_v24, %v173_v18  ;;  %v175_v31 = vld [vmem:[#allocation3 + $0x120] sm:$0xff]  ;;  %v176_v32 = vld [vmem:[#allocation3 + $0x128] sm:$0xff]  ;;  %v252_v36 = vsel %vm248_vm6, 1, %v2844_v0  ;;  %v284_v37 = vsel %vm280_vm7, 1, %v2844_v0  ;;  %v2300_v38 = vpack.c.bf16 %v160_v30, %v159_v29  ;;  %s1617_s9 = sshll.u32 %s2848_s26, 4  ;;  %s1618_s9 = int_to_ptr.vmem [resolvable:$true] %s1617_s9 }
  0x74   :  { %2325 = vmatprep.subr.bf16.mxu1 %v2324_v21  ;;  %v2298_v33 = vpack.c.bf16 %v142_v23, %v141_v22  ;;  %v143_v34 = vld [vmem:[#allocation3 + $0x20] sm:$0xff]  ;;  %v144_v35 = vld [vmem:[#allocation3 + $0x28] sm:$0xff]  ;;  %2297 = vmatprep.subr.bf16.mxu0 %v2296_v27  ;;  %v2332_v39 = vpack.c.bf16 %v176_v32, %v175_v31  ;;  %v161_v40 = vld [vmem:[#allocation3 + $0xb0] sm:$0xff]  ;;  %vm913_vm11 = vcmp.ge.s32.totalorder %v3056_v6, 4  ;;  %v918_v63 = vsel %vm914_vm10, 1, %v2844_v0  ;;  %s2804_s23 = scalar_lea.vmem %s1618_s9, 32  ;;  %p2809_p7 = scmp.lt.s32.totalorder %s1618_s9, %s1618_s9 }
  0x75   :  { %2327 = vmatpush3.bf16.msra.mxu1 %v2324_v21  ;;  %v162_v41 = vld [vmem:[#allocation3 + $0xb8] sm:$0xff]  ;;  %v177_v42 = vld [vmem:[#allocation3 + $0x130] sm:$0xff]  ;;  %v2302_v44 = vpack.c.bf16 %v144_v35, %v143_v34  ;;  %v163_v51 = vld [vmem:[#allocation3 + $0xc0] sm:$0xff]  ;;  %v917_v1 = vsel %vm913_vm11, 1, %v2844_v0  ;;  %vm2847_vm8 = vmmov 0   ;;  %vm1331_vm9 = vcmask 1040384   ;;  %p2805_p6 = scmp.ne.s32.totalorder %s1618_s9, %s2804_s23  ;;  %p2810_p8 = scmp.lt.s32.totalorder %s2804_s23, %s2804_s23 }
  0x76   :  { %2329 = vmatprep.subr.bf16.mxu1 %v2328_v28  ;;  %v178_v43 = vld [vmem:[#allocation3 + $0x138] sm:$0xff]  ;;  %2299 = vmatpush3.bf16.msra.mxu0 %v2298_v33  ;;  %v145_v45 = vld [vmem:[#allocation3 + $0x30] sm:$0xff]  ;;  %v2304_v49 = vpack.c.bf16 %v162_v41, %v161_v40  ;;  %v164_v52 = vld [vmem:[#allocation3 + $0xc8] sm:$0xff] }
  0x77   :  { %260 = vperm.xlu1 %2666, %v251_v25   ;;  %292 = vperm.xlu0 %2665, %v283_v26   ;;  %v146_v46 = vld [vmem:[#allocation3 + $0x38] sm:$0xff]  ;;  %v2336_v50 = vpack.c.bf16 %v178_v43, %v177_v42  ;;  %v147_v53 = vld [vmem:[#allocation3 + $0x40] sm:$0xff]  ;;  %v180_v55 = vld [vmem:[#allocation3 + $0x148] sm:$0xff]  ;;  %v2308_v2 = vpack.c.bf16 %v164_v52, %v163_v51  ;;  %p2811_p9 = por %p2810_p8, %p2809_p7 }
  0x78   :  { %2301 = vmatprep.subr.bf16.mxu0 %v2300_v38  ;;  %v179_v54 = vld [vmem:[#allocation3 + $0x140] sm:$0xff]  ;;  %v2306_v56 = vpack.c.bf16 %v146_v46, %v145_v45  ;;  %v148_v57 = vld [vmem:[#allocation3 + $0x48] sm:$0xff]  ;;  %v165_v58 = vld [vmem:[#allocation3 + $0xd0] sm:$0xff] }
  0x79   :  { %2331 = vmatpush3.bf16.msra.mxu1 %v2328_v28  ;;  %v3082_v59 = vld [vmem:[%s3288_s1] sm:$0xff]  ;;  %v181_v61 = vld [vmem:[#allocation3 + $0x150] sm:$0xff]  ;;  %v3088_v62 = vld [vmem:[%s3288_s1 + $0x8] sm:$0xff]  ;;  %v2340_v3 = vpack.c.bf16 %v180_v55, %v179_v54  ;;  %v2310_v0 = vpack.c.bf16 %v148_v57, %v147_v53  ;;  %p2812_p10 = pnand %p2811_p9, %p2805_p6 }
  0x7a   :  { %2333 = vmatprep.subr.bf16.mxu1 %v2332_v39  ;;  %2303 = vmatpush3.bf16.msra.mxu0 %v2302_v44  ;;  %v166_v60 = vld [vmem:[#allocation3 + $0xd8] sm:$0xff]  ;;  %237 = vst [vmem:[#allocation2 + $0x8] sm:$0xff] %v3082_v59  ;;  %238 = vst [vmem:[#allocation2 + $0x10] sm:$0xff] %v3088_v62  ;;  %v3100_v5 = vld [vmem:[%s3288_s1 + $0x10] sm:$0xff] }
  0x7b   :  { %263 = vperm.xlu1 %2666, %v252_v36   ;;  %295 = vperm.xlu0 %2665, %v284_v37   ;;  %v182_v4 = vld [vmem:[#allocation3 + $0x158] sm:$0xff]  ;;  %v3105_v7 = vld [vmem:[%s3288_s1 + $0x18] sm:$0xff]  ;;  %239 = vst [vmem:[#allocation2 + $0x18] sm:$0xff] %v3100_v5  ;;  %v2312_v6 = vpack.c.bf16 %v166_v60, %v165_v58  ;;  %v167_v11 = vld [vmem:[#allocation3 + $0xe0] sm:$0xff] }
  0x7c   :  { %2305 = vmatprep.subr.bf16.mxu0 %v2304_v49  ;;  %2029 = vmatprep.mubr.f32.mxu1 %v3082_v59  ;;  %240 = vst [vmem:[#allocation2 + $0x20] sm:$0xff] %v3105_v7  ;;  %v149_v8 = vld [vmem:[#allocation3 + $0x50] sm:$0xff]  ;;  %v150_v9 = vld [vmem:[#allocation3 + $0x58] sm:$0xff]  ;;  %v2344_v10 = vpack.c.bf16 %v182_v4, %v181_v61  ;;  %v168_v12 = vld [vmem:[#allocation3 + $0xe8] sm:$0xff] }
  0x7d   :  { %2335 = vmatpush3.bf16.msra.mxu1 %v2332_v39  ;;  %v183_v13 = vld [vmem:[#allocation3 + $0x160] sm:$0xff]  ;;  %v184_v14 = vld [vmem:[#allocation3 + $0x168] sm:$0xff]  ;;  %v2314_v15 = vpack.c.bf16 %v150_v9, %v149_v8  ;;  %v2316_v16 = vpack.c.bf16 %v168_v12, %v167_v11  ;;  %v169_v20 = vld [vmem:[#allocation3 + $0xf0] sm:$0xff] }
  0x7e   :  { %2337 = vmatprep.subr.bf16.mxu1 %v2336_v50  ;;  %2307 = vmatpush3.bf16.msra.mxu0 %v2306_v56  ;;  %v151_v17 = vld [vmem:[#allocation3 + $0x60] sm:$0xff]  ;;  %v152_v18 = vld [vmem:[#allocation3 + $0x68] sm:$0xff]  ;;  %v2348_v19 = vpack.c.bf16 %v184_v14, %v183_v13  ;;  %v170_v21 = vld [vmem:[#allocation3 + $0xf8] sm:$0xff] }
  0x7f   :  { %923 = vperm.xlu1 %2666, %v916_v47   ;;  %920 = vperm.xlu0 %2665, %v915_v48   ;;  %v185_v22 = vld [vmem:[#allocation3 + $0x170] sm:$0xff]  ;;  %v186_v23 = vld [vmem:[#allocation3 + $0x178] sm:$0xff]  ;;  %v2318_v24 = vpack.c.bf16 %v152_v18, %v151_v17  ;;  %v2320_v25 = vpack.c.bf16 %v170_v21, %v169_v20  ;;  %v220_v29 = vld [vmem:[#allocation6 + $0x100] sm:$0xff] }
  0x80   :  { %2309 = vmatprep.subr.bf16.mxu0 %v2308_v2  ;;  %v153_v26 = vld [vmem:[#allocation3 + $0x70] sm:$0xff]  ;;  %v154_v27 = vld [vmem:[#allocation3 + $0x78] sm:$0xff]  ;;  %v2352_v28 = vpack.c.bf16 %v186_v23, %v185_v22  ;;  %v221_v30 = vld [vmem:[#allocation6 + $0x108] sm:$0xff] }
  0x81   :  { %2339 = vmatpush3.bf16.msra.mxu1 %v2336_v50  ;;  %v204_v31 = vld [vmem:[#allocation6 + $0x80] sm:$0xff]  ;;  %v205_v32 = vld [vmem:[#allocation6 + $0x88] sm:$0xff]  ;;  %v2322_v33 = vpack.c.bf16 %v154_v27, %v153_v26  ;;  %v2388_v34 = vpack.c.bf16 %v221_v30, %v220_v29  ;;  %v222_v36 = vld [vmem:[#allocation6 + $0x110] sm:$0xff] }
  0x82   :  { %2341 = vmatprep.subr.bf16.mxu1 %v2340_v3  ;;  %2311 = vmatpush3.bf16.msra.mxu0 %v2310_v0  ;;  %v2356_v35 = vpack.c.bf16 %v205_v32, %v204_v31  ;;  %v223_v37 = vld [vmem:[#allocation6 + $0x118] sm:$0xff]  ;;  %v224_v39 = vld [vmem:[#allocation6 + $0x120] sm:$0xff]  ;;  %v225_v40 = vld [vmem:[#allocation6 + $0x128] sm:$0xff] }
  0x83   :  { %929 = vperm.xlu1 %2666, %v918_v63   ;;  %926 = vperm.xlu0 %2665, %v917_v1   ;;  %v2392_v38 = vpack.c.bf16 %v223_v37, %v222_v36  ;;  %v2396_v41 = vpack.c.bf16 %v225_v40, %v224_v39  ;;  %v226_v42 = vld [vmem:[#allocation6 + $0x130] sm:$0xff]  ;;  %v227_v43 = vld [vmem:[#allocation6 + $0x138] sm:$0xff]  ;;  %v228_v45 = vld [vmem:[#allocation6 + $0x140] sm:$0xff] }
  0x84   :  { %2313 = vmatprep.subr.bf16.mxu0 %v2312_v6  ;;  %v2400_v44 = vpack.c.bf16 %v227_v43, %v226_v42  ;;  %v229_v46 = vld [vmem:[#allocation6 + $0x148] sm:$0xff]  ;;  %v273_v48 = vld [vmem:[#allocation2 + $0x7] sm:$0xff]  ;;  %v206_v53 = vld [vmem:[#allocation6 + $0x90] sm:$0xff] }
  0x85   :  { %2343 = vmatpush3.bf16.msra.mxu1 %v2340_v3  ;;  %v2404_v47 = vpack.c.bf16 %v229_v46, %v228_v45  ;;  %v188_v51 = vld [vmem:[#allocation6] sm:$0xff]  ;;  %v189_v52 = vld [vmem:[#allocation6 + $0x8] sm:$0xff]  ;;  %v207_v54 = vld [vmem:[#allocation6 + $0x98] sm:$0xff] }
  0x86   :  { %2345 = vmatprep.subr.bf16.mxu1 %v2344_v10  ;;  %2315 = vmatpush3.bf16.msra.mxu0 %v2314_v15  ;;  %v241_v55 = vld [vmem:[#allocation2 + $0x6] sm:$0xff]  ;;  %v2358_v56 = vpack.c.bf16 %v189_v52, %v188_v51  ;;  %v274_v60 = vld [vmem:[#allocation2 + $0xf] sm:$0xff]  ;;  %v2360_v61 = vpack.c.bf16 %v207_v54, %v206_v53  ;;  %v190_v63 = vld [vmem:[#allocation6 + $0x10] sm:$0xff] }
  0x87   :  { %2317 = vmatprep.subr.bf16.mxu0 %v2316_v16  ;;  %v191_v1 = vld [vmem:[#allocation6 + $0x18] sm:$0xff]  ;;  %v208_v2 = vld [vmem:[#allocation6 + $0xa0] sm:$0xff]  ;;  %v209_v3 = vld [vmem:[#allocation6 + $0xa8] sm:$0xff] }
  0x88   :  { %v242_v4 = vld [vmem:[#allocation2 + $0xe] sm:$0xff]  ;;  %v2362_v0 = vpack.c.bf16 %v191_v1, %v190_v63  ;;  %v275_v9 = vld [vmem:[#allocation2 + $0x17] sm:$0xff]  ;;  %v211_v14 = vld [vmem:[#allocation6 + $0xb8] sm:$0xff] }
  0x89   :  { %2347 = vmatpush3.bf16.msra.mxu1 %v2344_v10  ;;  %v2364_v10 = vpack.c.bf16 %v209_v3, %v208_v2  ;;  %v192_v11 = vld [vmem:[#allocation6 + $0x20] sm:$0xff]  ;;  %v193_v12 = vld [vmem:[#allocation6 + $0x28] sm:$0xff]  ;;  %v210_v13 = vld [vmem:[#allocation6 + $0xb0] sm:$0xff] }
  0x8a   :  { %2349 = vmatprep.subr.bf16.mxu1 %v2348_v19  ;;  %2319 = vmatpush3.bf16.msra.mxu0 %v2318_v24  ;;  %v243_v15 = vld [vmem:[#allocation2 + $0x16] sm:$0xff]  ;;  %v2366_v16 = vpack.c.bf16 %v193_v12, %v192_v11  ;;  %v276_v18 = vld [vmem:[#allocation2 + $0x1f] sm:$0xff]  ;;  %v196_v30 = vld [vmem:[#allocation6 + $0x40] sm:$0xff] }
  0x8b   :  { %2321 = vmatprep.subr.bf16.mxu0 %v2320_v25  ;;  %v194_v20 = vld [vmem:[#allocation6 + $0x30] sm:$0xff]  ;;  %v195_v21 = vld [vmem:[#allocation6 + $0x38] sm:$0xff]  ;;  %v212_v25 = vld [vmem:[#allocation6 + $0xc0] sm:$0xff] }
  0x8c   :  { %v244_v23 = vld [vmem:[#allocation2 + $0x1e] sm:$0xff]  ;;  %v2370_v24 = vpack.c.bf16 %v195_v21, %v194_v20  ;;  %v213_v26 = vld [vmem:[#allocation6 + $0xc8] sm:$0xff]  ;;  %v232_v37 = vld [vmem:[#allocation6 + $0x160] sm:$0xff] }
  0x8d   :  { %2351 = vmatpush3.bf16.msra.mxu1 %v2348_v19  ;;  %v2368_v19 = vpack.c.bf16 %v211_v14, %v210_v13  ;;  %v230_v27 = vld [vmem:[#allocation6 + $0x150] sm:$0xff]  ;;  %v231_v29 = vld [vmem:[#allocation6 + $0x158] sm:$0xff]  ;;  %v197_v31 = vld [vmem:[#allocation6 + $0x48] sm:$0xff] }
  0x8e   :  { %2353 = vmatprep.subr.bf16.mxu1 %v2352_v28  ;;  %2323 = vmatpush3.bf16.msra.mxu0 %v2322_v33  ;;  %v2408_v32 = vpack.c.bf16 %v231_v29, %v230_v27  ;;  %v2374_v33 = vpack.c.bf16 %v197_v31, %v196_v30  ;;  %v198_v39 = vld [vmem:[#allocation6 + $0x50] sm:$0xff]  ;;  %v216_v43 = vld [vmem:[#allocation6 + $0xe0] sm:$0xff]  ;;  %v201_v51 = vld [vmem:[#allocation6 + $0x68] sm:$0xff] }
  0x8f   :  { %2357 = vmatprep.subr.bf16.mxu0 %v2356_v35  ;;  %v215_v35 = vld [vmem:[#allocation6 + $0xd8] sm:$0xff]  ;;  %v234_v45 = vld [vmem:[#allocation6 + $0x170] sm:$0xff]  ;;  %v685_v1 = vld [vmem:[#allocation8] sm:$0xff] }
  0x90   :  { %v218_v54 = vld [vmem:[#allocation6 + $0xf0] sm:$0xff]  ;;  %v686_v2 = vld [vmem:[#allocation8 + $0x8] sm:$0xff]  ;;  %v1629_v13 = vld [vmem:[%s3290_s3] ss:$0 sm:$0xff] }
  0x91   :  { %2355 = vmatpush3.bf16.msra.mxu1 %v2352_v28  ;;  %v2372_v28 = vpack.c.bf16 %v213_v26, %v212_v25  ;;  %v2420_v3 = vpack.c.bf16 %v686_v2, %v685_v1  ;;  %v697_v1 = vld [vmem:[#allocation8 + $0x60] sm:$0xff]  ;;  %v698_v2 = vld [vmem:[#allocation8 + $0x68] sm:$0xff] }
  0x92   :  { %2389 = vmatprep.subr.bf16.mxu1 %v2388_v34 }
  0x94   :  { %2030 = vmatmul.mubr.f32.vlgmr.msra.gmra.mrb[0].mxu1 %v3088_v62 }
  0x95   :  { %2032 = vmatprep.mubr.f32.mxu1 %v3100_v5  ;;  %2391 = vmatpush3.bf16.msra.mxu1 %v2388_v34  ;;  %v214_v34 = vld [vmem:[#allocation6 + $0xd0] sm:$0xff] }
  0x96   :  { %2393 = vmatprep.subr.bf16.mxu1 %v2392_v38  ;;  %v2376_v36 = vpack.c.bf16 %v215_v35, %v214_v34  ;;  %v687_v34 = vld [vmem:[#allocation8 + $0x10] sm:$0xff]  ;;  %v688_v35 = vld [vmem:[#allocation8 + $0x18] sm:$0xff] }
  0x98   :  { %2033 = vmatmul.mubr.f32.gmra.mrb[2].mxu1 %v3105_v7 }
  0x99   :  { %2395 = vmatpush3.bf16.msra.mxu1 %v2392_v38  ;;  %v233_v38 = vld [vmem:[#allocation6 + $0x168] sm:$0xff] }
  0x9a   :  { %2397 = vmatprep.subr.bf16.mxu1 %v2396_v41  ;;  %v2412_v40 = vpack.c.bf16 %v233_v38, %v232_v37 }
  0x9d   :  { %2399 = vmatpush3.bf16.msra.mxu1 %v2396_v41  ;;  %v199_v41 = vld [vmem:[#allocation6 + $0x58] sm:$0xff] }
  0x9e   :  { %2401 = vmatprep.subr.bf16.mxu1 %v2400_v44  ;;  %v2378_v42 = vpack.c.bf16 %v199_v41, %v198_v39 }
  0xa1   :  { %2403 = vmatpush3.bf16.msra.mxu1 %v2400_v44  ;;  %v217_v44 = vld [vmem:[#allocation6 + $0xe8] sm:$0xff] }
  0xa2   :  { %2405 = vmatprep.subr.bf16.mxu1 %v2404_v47  ;;  %v2380_v46 = vpack.c.bf16 %v217_v44, %v216_v43  ;;  %v690_v43 = vld [vmem:[#allocation8 + $0x28] sm:$0xff] }
  0xa5   :  { %2407 = vmatpush3.bf16.msra.mxu1 %v2404_v47  ;;  %v235_v47 = vld [vmem:[#allocation6 + $0x178] sm:$0xff] }
  0xa6   :  { %2409 = vmatprep.subr.bf16.mxu1 %v2408_v32  ;;  %v2416_v52 = vpack.c.bf16 %v235_v47, %v234_v45 }
  0xa9   :  { %2411 = vmatpush3.bf16.msra.mxu1 %v2408_v32 }
  0xaa   :  { %2413 = vmatprep.subr.bf16.mxu1 %v2412_v40 }
  0xad   :  { %2415 = vmatpush3.bf16.msra.mxu1 %v2412_v40  ;;  %v2424_v40 = vpack.c.bf16 %v688_v35, %v687_v34  ;;  %v843_v35 = vld [vmem:[#allocation3 + $0x2c8] sm:$0xff] }
  0xae   :  { %2417 = vmatprep.subr.bf16.mxu1 %v2416_v52 }
  0xb1   :  { %2419 = vmatpush3.bf16.msra.mxu1 %v2416_v52 }
  0xee   :  { %v3113_v49 = vpop.permute.xlu1 %289  ;;  %v3115_v50 = vpop.permute.xlu0 %286 }
  0xef   :  { %vm297_vm12 = vcmp.eq.s32.totalorder %v3115_v50, 1  ;;  %vm298_vm13 = vcmp.eq.s32.totalorder %v3113_v49, 1  ;;  %v691_v50 = vld [vmem:[#allocation8 + $0x30] sm:$0xff] }
  0xf0   :  { %1630 = vmatprep.mubr.msk.f32.mxu0 %vm297_vm12, %v273_v48  ;;  %v200_v48 = vld [vmem:[#allocation6 + $0x60] sm:$0xff] }
  0xf1   :  { %v2382_v53 = vpack.c.bf16 %v201_v51, %v200_v48  ;;  %v692_v48 = vld [vmem:[#allocation8 + $0x38] sm:$0xff] }
  0xf2   :  { %v3121_v57 = vpop.permute.xlu1 %257  ;;  %v3123_v58 = vpop.permute.xlu0 %254 }
  0xf3   :  { %vm265_vm14 = vcmp.eq.s32.totalorder %v3123_v58, 1  ;;  %vm266_vm15 = vcmp.eq.s32.totalorder %v3121_v57, 1  ;;  %v1351_v57 = vld [vmem:[#allocation9] sm:$0xff] }
  0xf4   :  { %1631 = vmatmul.mubr.msk.f32.vlgmr.msra.gmra.mrb[0].mxu0 %vm265_vm14, %v241_v55  ;;  %v219_v55 = vld [vmem:[#allocation6 + $0xf8] sm:$0xff] }
  0xf5   :  { %1632 = vmatprep.mubr.msk.f32.mxu0 %vm298_vm13, %v274_v60  ;;  %2359 = vmatpush3.bf16.msra.mxu0 %v2358_v56  ;;  %v2384_v56 = vpack.c.bf16 %v219_v55, %v218_v54  ;;  %v202_v60 = vld [vmem:[#allocation6 + $0x70] sm:$0xff]  ;;  %v693_v54 = vld [vmem:[#allocation8 + $0x40] sm:$0xff]  ;;  %v694_v55 = vld [vmem:[#allocation8 + $0x48] sm:$0xff] }
  0xf6   :  { %v3131_v6 = vpop.permute.xlu1 %260  ;;  %v3133_v8 = vpop.permute.xlu0 %292  ;;  %2361 = vmatprep.subr.bf16.mxu0 %v2360_v61  ;;  %v203_v61 = vld [vmem:[#allocation6 + $0x78] sm:$0xff] }
  0xf7   :  { %vm299_vm0 = vcmp.eq.s32.totalorder %v3133_v8, 1  ;;  %vm267_vm1 = vcmp.eq.s32.totalorder %v3131_v6, 1  ;;  %v2386_v63 = vpack.c.bf16 %v203_v61, %v202_v60  ;;  %v2436_v60 = vpack.c.bf16 %v694_v55, %v693_v54  ;;  %v695_v61 = vld [vmem:[#allocation8 + $0x50] sm:$0xff]  ;;  %v847_v54 = vld [vmem:[#allocation3 + $0x2e8] sm:$0xff]  ;;  %v810_v55 = vld [vmem:[#allocation3 + $0x1c0] sm:$0xff] }
  0xf8   :  { %1633 = vmatmul.mubr.msk.f32.gmra.mrb[2].mxu0 %vm266_vm15, %v242_v4 }
  0xf9   :  { %1634 = vmatprep.mubr.msk.f32.mxu0 %vm299_vm0, %v275_v9  ;;  %2363 = vmatpush3.bf16.msra.mxu0 %v2362_v0 }
  0xfa   :  { %v3141_v17 = vpop.permute.xlu0 %295  ;;  %2365 = vmatprep.subr.bf16.mxu0 %v2364_v10  ;;  %v3144_v22 = vpop.permute.xlu1 %263 }
  0xfb   :  { %vm300_vm2 = vcmp.eq.s32.totalorder %v3141_v17, 1  ;;  %vm268_vm3 = vcmp.eq.s32.totalorder %v3144_v22, 1  ;;  %v1353_v22 = vld [vmem:[#allocation9 + $0x10] sm:$0xff] }
  0xfc   :  { %1635 = vmatmul.mubr.msk.f32.gmra.mrb[4].mxu0 %vm267_vm1, %v243_v15 }
  0xfd   :  { %1636 = vmatprep.mubr.msk.f32.mxu0 %vm300_vm2, %v276_v18  ;;  %2367 = vmatpush3.bf16.msra.mxu0 %v2366_v16 }
  0xfe   :  { %2369 = vmatprep.subr.bf16.mxu0 %v2368_v19 }
 0x100   :  { %1637 = vmatmul.mubr.msk.f32.gmra.mrb[6].mxu0 %vm268_vm3, %v244_v23 }
 0x101   :  { %2371 = vmatpush3.bf16.msra.mxu0 %v2370_v24 }
 0x102   :  { %2373 = vmatprep.subr.bf16.mxu0 %v2372_v28 }
 0x105   :  { %2375 = vmatpush3.bf16.msra.mxu0 %v2374_v33 }
 0x106   :  { %2377 = vmatprep.subr.bf16.mxu0 %v2376_v36 }
 0x109   :  { %2379 = vmatpush3.bf16.msra.mxu0 %v2378_v42  ;;  %v689_v42 = vld [vmem:[#allocation8 + $0x20] sm:$0xff] }
 0x10a   :  { %2381 = vmatprep.subr.bf16.mxu0 %v2380_v46  ;;  %v2428_v47 = vpack.c.bf16 %v690_v43, %v689_v42  ;;  %v844_v42 = vld [vmem:[#allocation3 + $0x2d0] sm:$0xff] }
 0x10d   :  { %2383 = vmatpush3.bf16.msra.mxu0 %v2382_v53  ;;  %v2432_v53 = vpack.c.bf16 %v692_v48, %v691_v50  ;;  %v826_v48 = vld [vmem:[#allocation3 + $0x240] sm:$0xff] }
 0x10e   :  { %2385 = vmatprep.subr.bf16.mxu0 %v2384_v56 }
 0x111   :  { %2387 = vmatpush3.bf16.msra.mxu0 %v2386_v63  ;;  %v696_v63 = vld [vmem:[#allocation8 + $0x58] sm:$0xff] }
 0x112   :  { %2421 = vmatprep.subr.bf16.mxu0 %v2420_v3  ;;  %v2440_v8 = vpack.c.bf16 %v696_v63, %v695_v61  ;;  %v828_v61 = vld [vmem:[#allocation3 + $0x250] sm:$0xff]  ;;  %v829_v63 = vld [vmem:[#allocation3 + $0x258] sm:$0xff] }
 0x167   :  { %v2031_v4 = vpop.f32.mrb[0].mxu1 }
 0x168   :  { %v462_v0 = vpop.f32.mrb[1].mxu1 }
 0x16b   :  { %v2034_v9 = vpop.f32.mrb[2].mxu1 }
 0x16c   :  { %v472_v10 = vpop.f32.mrb[3].mxu1 }
 0x1c7   :  { %v1702_v11 = vpop.f32.mrb[0].mxu0 }
 0x1c8   :  { %v1703_v12 = vpop.f32.mrb[1].mxu0 }
 0x1c9   :  { %v1704_v14 = vadd.f32 %v1703_v12, %v1702_v11  ;;  %v836_v11 = vld [vmem:[#allocation3 + $0x290] sm:$0xff]  ;;  %v837_v12 = vld [vmem:[#allocation3 + $0x298] sm:$0xff] }
 0x1cb   :  { %v1705_v15 = vpop.f32.mrb[2].mxu0  ;;  %v378_v16 = vadd.f32 %v1704_v14, %v1629_v13  ;;  %v818_v14 = vld [vmem:[#allocation3 + $0x200] sm:$0xff] }
 0x1cc   :  { %v1706_v18 = vpop.f32.mrb[3].mxu0 }
 0x1cd   :  { %v463_v19 = vadd.f32 %v462_v0, %v378_v16  ;;  %v1707_v20 = vadd.f32 %v1706_v18, %v1705_v15  ;;  %v700_v0 = vld [vmem:[#allocation8 + $0x78] sm:$0xff]  ;;  %v819_v15 = vld [vmem:[#allocation3 + $0x208] sm:$0xff]  ;;  %v838_v16 = vld [vmem:[#allocation3 + $0x2a0] sm:$0xff] }
 0x1ce   :  { %v2452_v18 = vpack.c.bf16 %v819_v15, %v818_v14  ;;  %v832_v14 = vld [vmem:[#allocation3 + $0x270] sm:$0xff]  ;;  %v833_v15 = vld [vmem:[#allocation3 + $0x278] sm:$0xff] }
 0x1cf   :  { %v481_v21 = vmax.f32 %v463_v19, 0.0  ;;  %v383_v23 = vadd.f32 %v1707_v20, %v1629_v13  ;;  %v1708_v24 = vpop.f32.mrb[4].mxu0  ;;  %v839_v19 = vld [vmem:[#allocation3 + $0x2a8] sm:$0xff] }
 0x1d0   :  { %v1709_v25 = vpop.f32.mrb[5].mxu0  ;;  %v803_v20 = vld [vmem:[#allocation3 + $0x188] sm:$0xff]  ;;  %2453 = vmatprep.subr.bf16.mxu1 %v2452_v18  ;;  %v816_v18 = vld [vmem:[#allocation3 + $0x1f0] sm:$0xff] }
 0x1d1   :  { %485 = vst [vmem:[#allocation2 + $0x8] sm:$0xff] %v481_v21  ;;  %v468_v26 = vadd.f32 %v2031_v4, %v383_v23  ;;  %v1710_v27 = vadd.f32 %v1709_v25, %v1708_v24  ;;  %2067 = vmatprep.mubr.f32.mxu1 %v481_v21  ;;  %v699_v4 = vld [vmem:[#allocation8 + $0x70] sm:$0xff]  ;;  %v821_v23 = vld [vmem:[#allocation3 + $0x218] sm:$0xff] }
 0x1d2   :  { %v2448_v17 = vpack.c.bf16 %v700_v0, %v699_v4  ;;  %v840_v24 = vld [vmem:[#allocation3 + $0x2b0] sm:$0xff]  ;;  %v813_v4 = vld [vmem:[#allocation3 + $0x1d8] sm:$0xff] }
 0x1d3   :  { %v482_v28 = vmax.f32 %v468_v26, 0.0  ;;  %v1711_v29 = vpop.f32.mrb[6].mxu0  ;;  %v388_v30 = vadd.f32 %v1710_v27, %v1629_v13  ;;  %v841_v26 = vld [vmem:[#allocation3 + $0x2b8] sm:$0xff]  ;;  %v804_v27 = vld [vmem:[#allocation3 + $0x190] sm:$0xff] }
 0x1d4   :  { %v1712_v31 = vpop.f32.mrb[7].mxu0 }
 0x1d5   :  { %486 = vst [vmem:[#allocation2 + $0x10] sm:$0xff] %v482_v28  ;;  %v1713_v32 = vadd.f32 %v1712_v31, %v1711_v29  ;;  %v473_v33 = vadd.f32 %v472_v10, %v388_v30  ;;  %2068 = vmatmul.mubr.f32.vlgmr.msra.gmra.mrb[4].mxu1 %v482_v28  ;;  %v805_v28 = vld [vmem:[#allocation3 + $0x198] sm:$0xff]  ;;  %v2496_v29 = vpack.c.bf16 %v841_v26, %v840_v24  ;;  %v822_v31 = vld [vmem:[#allocation3 + $0x220] sm:$0xff] }
 0x1d6   :  { %v2458_v30 = vpack.c.bf16 %v805_v28, %v804_v27  ;;  %v1638_v28 = vld [vmem:[%s3292_s5] ss:$0 sm:$0xff] }
 0x1d7   :  { %v393_v36 = vadd.f32 %v1713_v32, %v1629_v13  ;;  %v483_v37 = vmax.f32 %v473_v33, 0.0  ;;  %v2488_v13 = vpack.c.bf16 %v837_v12, %v836_v11  ;;  %v823_v32 = vld [vmem:[#allocation3 + $0x228] sm:$0xff]  ;;  %v842_v33 = vld [vmem:[#allocation3 + $0x2c0] sm:$0xff] }
 0x1d8   :  { %v497_v38 = vld [vmem:[#allocation2 + $0x7] sm:$0xff]  ;;  %v2460_v34 = vpack.c.bf16 %v823_v32, %v822_v31  ;;  %v815_v12 = vld [vmem:[#allocation3 + $0x1e8] sm:$0xff] }
 0x1d9   :  { %v489_v39 = vld [vmem:[#allocation2 + $0x6] sm:$0xff]  ;;  %487 = vst [vmem:[#allocation2 + $0x18] sm:$0xff] %v483_v37  ;;  %1639 = vmatprep.mubr.msk.f32.mxu0 %vm297_vm12, %v497_v38  ;;  %2070 = vmatprep.mubr.f32.mxu1 %v483_v37  ;;  %v478_v41 = vadd.f32 %v2034_v9, %v393_v36  ;;  %v835_v9 = vld [vmem:[#allocation3 + $0x288] sm:$0xff]  ;;  %v2500_v38 = vpack.c.bf16 %v843_v35, %v842_v33 }
 0x1da   :  { %1640 = vmatmul.mubr.msk.f32.vlgmr.msra.gmra.mrb[8].mxu0 %vm265_vm14, %v489_v39  ;;  %v806_v36 = vld [vmem:[#allocation3 + $0x1a0] sm:$0xff]  ;;  %v807_v37 = vld [vmem:[#allocation3 + $0x1a8] sm:$0xff] }
 0x1db   :  { %2423 = vmatpush3.bf16.msra.mxu0 %v2420_v3  ;;  %v484_v44 = vmax.f32 %v478_v41, 0.0  ;;  %v2444_v3 = vpack.c.bf16 %v698_v2, %v697_v1  ;;  %v2462_v39 = vpack.c.bf16 %v807_v37, %v806_v36  ;;  %v825_v41 = vld [vmem:[#allocation3 + $0x238] sm:$0xff]  ;;  %v2472_v1 = vpack.c.bf16 %v829_v63, %v828_v61  ;;  %v814_v11 = vld [vmem:[#allocation3 + $0x1e0] sm:$0xff] }
 0x1dc   :  { %v498_v45 = vld [vmem:[#allocation2 + $0xf] sm:$0xff]  ;;  %2425 = vmatprep.subr.bf16.mxu0 %v2424_v40  ;;  %v849_v2 = vld [vmem:[#allocation3 + $0x2f8] sm:$0xff] }
 0x1dd   :  { %v490_v46 = vld [vmem:[#allocation2 + $0xe] sm:$0xff]  ;;  %1641 = vmatprep.mubr.msk.f32.mxu0 %vm298_vm13, %v498_v45  ;;  %488 = vst [vmem:[#allocation2 + $0x20] sm:$0xff] %v484_v44  ;;  %2071 = vmatmul.mubr.f32.gmra.mrb[6].mxu1 %v484_v44  ;;  %v845_v44 = vld [vmem:[#allocation3 + $0x2d8] sm:$0xff]  ;;  %v808_v45 = vld [vmem:[#allocation3 + $0x1b0] sm:$0xff] }
 0x1de   :  { %1642 = vmatmul.mubr.msk.f32.gmra.mrb[10].mxu0 %vm266_vm15, %v490_v46  ;;  %v809_v46 = vld [vmem:[#allocation3 + $0x1b8] sm:$0xff] }
 0x1df   :  { %2427 = vmatpush3.bf16.msra.mxu0 %v2424_v40  ;;  %v824_v40 = vld [vmem:[#allocation3 + $0x230] sm:$0xff]  ;;  %v2466_v50 = vpack.c.bf16 %v809_v46, %v808_v45 }
 0x1e0   :  { %v499_v51 = vld [vmem:[#allocation2 + $0x17] sm:$0xff]  ;;  %2429 = vmatprep.subr.bf16.mxu0 %v2428_v47  ;;  %v2464_v43 = vpack.c.bf16 %v825_v41, %v824_v40 }
 0x1e1   :  { %v491_v52 = vld [vmem:[#allocation2 + $0x16] sm:$0xff]  ;;  %1643 = vmatprep.mubr.msk.f32.mxu0 %vm299_vm0, %v499_v51 }
 0x1e2   :  { %1644 = vmatmul.mubr.msk.f32.gmra.mrb[12].mxu0 %vm267_vm1, %v491_v52  ;;  %v827_v51 = vld [vmem:[#allocation3 + $0x248] sm:$0xff]  ;;  %v846_v52 = vld [vmem:[#allocation3 + $0x2e0] sm:$0xff] }
 0x1e3   :  { %2431 = vmatpush3.bf16.msra.mxu0 %v2428_v47  ;;  %v2504_v47 = vpack.c.bf16 %v845_v44, %v844_v42 }
 0x1e4   :  { %v500_v49 = vld [vmem:[#allocation2 + $0x1f] sm:$0xff]  ;;  %2433 = vmatprep.subr.bf16.mxu0 %v2432_v53 }
 0x1e5   :  { %v492_v56 = vld [vmem:[#allocation2 + $0x1e] sm:$0xff]  ;;  %1645 = vmatprep.mubr.msk.f32.mxu0 %vm300_vm2, %v500_v49  ;;  %v811_v49 = vld [vmem:[#allocation3 + $0x1c8] sm:$0xff] }
 0x1e6   :  { %1646 = vmatmul.mubr.msk.f32.gmra.mrb[14].mxu0 %vm268_vm3, %v492_v56  ;;  %v2508_v56 = vpack.c.bf16 %v847_v54, %v846_v52 }
 0x1e7   :  { %2435 = vmatpush3.bf16.msra.mxu0 %v2432_v53  ;;  %2105 = vmatprep.mubr.f32.mxu0 %v3082_v59  ;;  %v834_v59 = vld [vmem:[#allocation3 + $0x280] sm:$0xff]  ;;  %v2468_v53 = vpack.c.bf16 %v827_v51, %v826_v48  ;;  %v1647_v51 = vld [vmem:[%s3294_s7] ss:$0 sm:$0xff] }
 0x1e8   :  { %2437 = vmatprep.subr.bf16.mxu0 %v2436_v60  ;;  %v2484_v10 = vpack.c.bf16 %v835_v9, %v834_v59  ;;  %v830_v59 = vld [vmem:[#allocation3 + $0x260] sm:$0xff]  ;;  %v831_v9 = vld [vmem:[#allocation3 + $0x268] sm:$0xff] }
 0x1eb   :  { %2439 = vmatpush3.bf16.msra.mxu0 %v2436_v60  ;;  %v2470_v60 = vpack.c.bf16 %v811_v49, %v810_v55 }
 0x1ec   :  { %2441 = vmatprep.subr.bf16.mxu0 %v2440_v8 }
 0x1ef   :  { %2443 = vmatpush3.bf16.msra.mxu0 %v2440_v8  ;;  %v848_v8 = vld [vmem:[#allocation3 + $0x2f0] sm:$0xff] }
 0x1f0   :  { %2445 = vmatprep.subr.bf16.mxu0 %v2444_v3  ;;  %v2512_v0 = vpack.c.bf16 %v849_v2, %v848_v8  ;;  %v887_v8 = vld [vmem:[#allocation6 + $0x290] sm:$0xff] }
 0x1f3   :  { %2447 = vmatpush3.bf16.msra.mxu0 %v2444_v3  ;;  %v812_v3 = vld [vmem:[#allocation3 + $0x1d0] sm:$0xff] }
 0x1f4   :  { %2449 = vmatprep.subr.bf16.mxu0 %v2448_v17 }
 0x1f7   :  { %2451 = vmatpush3.bf16.msra.mxu0 %v2448_v17  ;;  %v2474_v17 = vpack.c.bf16 %v813_v4, %v812_v3 }
 0x1f8   :  { %2485 = vmatprep.subr.bf16.mxu0 %v2484_v10 }
 0x1fa   :  { %2106 = vmatmul.mubr.f32.vlgmr.msra.gmra.mrb[16].mxu0 %v3088_v62  ;;  %v802_v62 = vld [vmem:[#allocation3 + $0x180] sm:$0xff] }
 0x1fb   :  { %2108 = vmatprep.mubr.f32.mxu0 %v3100_v5  ;;  %2487 = vmatpush3.bf16.msra.mxu0 %v2484_v10  ;;  %v2492_v5 = vpack.c.bf16 %v839_v19, %v838_v16  ;;  %v2454_v21 = vpack.c.bf16 %v803_v20, %v802_v62  ;;  %v2476_v10 = vpack.c.bf16 %v831_v9, %v830_v59  ;;  %v817_v19 = vld [vmem:[#allocation3 + $0x1f8] sm:$0xff]  ;;  %v885_v20 = vld [vmem:[#allocation6 + $0x280] sm:$0xff] }
 0x1fc   :  { %2489 = vmatprep.subr.bf16.mxu0 %v2488_v13  ;;  %v2480_v16 = vpack.c.bf16 %v833_v15, %v832_v14  ;;  %v2482_v62 = vpack.c.bf16 %v817_v19, %v816_v18  ;;  %v890_v14 = vld [vmem:[#allocation6 + $0x2a8] sm:$0xff]  ;;  %v853_v18 = vld [vmem:[#allocation6 + $0x180] sm:$0xff] }
 0x1fd   :  { %2455 = vmatpush3.bf16.msra.mxu1 %v2454_v21  ;;  %v854_v19 = vld [vmem:[#allocation6 + $0x188] sm:$0xff] }
 0x1fe   :  { %2109 = vmatmul.mubr.f32.gmra.mrb[18].mxu0 %v3105_v7  ;;  %v820_v7 = vld [vmem:[#allocation3 + $0x210] sm:$0xff] }
 0x1ff   :  { %2491 = vmatpush3.bf16.msra.mxu0 %v2488_v13  ;;  %v2456_v25 = vpack.c.bf16 %v821_v23, %v820_v7  ;;  %v2478_v13 = vpack.c.bf16 %v815_v12, %v814_v11  ;;  %v869_v7 = vld [vmem:[#allocation6 + $0x200] sm:$0xff]  ;;  %v870_v23 = vld [vmem:[#allocation6 + $0x208] sm:$0xff] }
 0x200   :  { %2493 = vmatprep.subr.bf16.mxu0 %v2492_v5  ;;  %v2516_v24 = vpack.c.bf16 %v870_v23, %v869_v7  ;;  %v3189_v7 = vpop.permute.xlu0 %920  ;;  %v2518_v23 = vpack.c.bf16 %v854_v19, %v853_v18  ;;  %v899_v18 = vld [vmem:[#allocation6 + $0x2f0] sm:$0xff]  ;;  %v900_v19 = vld [vmem:[#allocation6 + $0x2f8] sm:$0xff] }
 0x201   :  { %2457 = vmatprep.subr.bf16.mxu1 %v2456_v25  ;;  %vm931_vm4 = vcmp.eq.s32.totalorder %v3189_v7, 1 }
 0x202   :  { %2459 = vmatpush3.bf16.msra.mxu1 %v2458_v30 }
 0x203   :  { %2495 = vmatpush3.bf16.msra.mxu0 %v2492_v5  ;;  %2461 = vmatprep.subr.bf16.mxu1 %v2460_v34  ;;  %v886_v5 = vld [vmem:[#allocation6 + $0x288] sm:$0xff] }
 0x204   :  { %2497 = vmatprep.subr.bf16.mxu0 %v2496_v29  ;;  %v2548_v21 = vpack.c.bf16 %v886_v5, %v885_v20  ;;  %v871_v20 = vld [vmem:[#allocation6 + $0x210] sm:$0xff]  ;;  %v872_v5 = vld [vmem:[#allocation6 + $0x218] sm:$0xff] }
 0x206   :  { %2463 = vmatpush3.bf16.msra.mxu1 %v2462_v39 }
 0x207   :  { %2499 = vmatpush3.bf16.msra.mxu0 %v2496_v29  ;;  %2465 = vmatprep.subr.bf16.mxu1 %v2464_v43 }
 0x208   :  { %2501 = vmatprep.subr.bf16.mxu0 %v2500_v38 }
 0x20a   :  { %2467 = vmatpush3.bf16.msra.mxu1 %v2466_v50 }
 0x20b   :  { %2503 = vmatpush3.bf16.msra.mxu0 %v2500_v38  ;;  %2469 = vmatprep.subr.bf16.mxu1 %v2468_v53 }
 0x20c   :  { %2505 = vmatprep.subr.bf16.mxu0 %v2504_v47 }
 0x20e   :  { %2471 = vmatpush3.bf16.msra.mxu1 %v2470_v60 }
 0x20f   :  { %2507 = vmatpush3.bf16.msra.mxu0 %v2504_v47  ;;  %2473 = vmatprep.subr.bf16.mxu1 %v2472_v1  ;;  %v888_v1 = vld [vmem:[#allocation6 + $0x298] sm:$0xff] }
 0x210   :  { %2509 = vmatprep.subr.bf16.mxu0 %v2508_v56  ;;  %v2552_v11 = vpack.c.bf16 %v888_v1, %v887_v8  ;;  %v878_v8 = vld [vmem:[#allocation6 + $0x248] sm:$0xff] }
 0x212   :  { %2475 = vmatpush3.bf16.msra.mxu1 %v2474_v17 }
 0x213   :  { %2511 = vmatpush3.bf16.msra.mxu0 %v2508_v56  ;;  %2477 = vmatprep.subr.bf16.mxu1 %v2476_v10 }
 0x214   :  { %2513 = vmatprep.subr.bf16.mxu0 %v2512_v0 }
 0x216   :  { %2479 = vmatpush3.bf16.msra.mxu1 %v2478_v13  ;;  %v889_v13 = vld [vmem:[#allocation6 + $0x2a0] sm:$0xff] }
 0x217   :  { %2515 = vmatpush3.bf16.msra.mxu0 %v2512_v0  ;;  %2481 = vmatprep.subr.bf16.mxu1 %v2480_v16 }
 0x218   :  { %2549 = vmatprep.subr.bf16.mxu0 %v2548_v21 }
 0x21a   :  { %2483 = vmatpush3.bf16.msra.mxu1 %v2482_v62  ;;  %v2556_v62 = vpack.c.bf16 %v890_v14, %v889_v13  ;;  %v863_v13 = vld [vmem:[#allocation6 + $0x1d0] sm:$0xff]  ;;  %v864_v14 = vld [vmem:[#allocation6 + $0x1d8] sm:$0xff] }
 0x21b   :  { %2517 = vmatprep.subr.bf16.mxu1 %v2516_v24 }
 0x2a8   :  { %v2069_v25 = vpop.f32.mrb[4].mxu1 }
 0x2a9   :  { %v662_v26 = vpop.f32.mrb[5].mxu1 }
 0x2ad   :  { %v1766_v27 = vpop.f32.mrb[8].mxu0 }
 0x2ae   :  { %v1767_v29 = vpop.f32.mrb[9].mxu0 }
 0x2af   :  { %v1768_v30 = vadd.f32 %v1767_v29, %v1766_v27  ;;  %v3199_v27 = vpop.permute.xlu1 %923  ;;  %v3202_v29 = vpop.permute.xlu0 %926 }
 0x2b0   :  { %v2072_v31 = vpop.f32.mrb[6].mxu1  ;;  %vm932_vm5 = vcmp.eq.s32.totalorder %v3199_v27, 1  ;;  %vm933_vm6 = vcmp.eq.s32.totalorder %v3202_v29, 1  ;;  %v1354_v29 = vld [vmem:[#allocation9 + $0x18] sm:$0xff] }
 0x2b1   :  { %v578_v32 = vadd.f32 %v1768_v30, %v1638_v28  ;;  %v1769_v33 = vpop.f32.mrb[10].mxu0  ;;  %v672_v34 = vpop.f32.mrb[7].mxu1 }
 0x2b2   :  { %v1770_v35 = vpop.f32.mrb[11].mxu0 }
 0x2b3   :  { %v663_v36 = vadd.f32 %v662_v26, %v578_v32  ;;  %v1771_v37 = vadd.f32 %v1770_v35, %v1769_v33  ;;  %v3209_v32 = vpop.permute.xlu1 %929  ;;  %v855_v35 = vld [vmem:[#allocation6 + $0x190] sm:$0xff] }
 0x2b4   :  { %vm934_vm7 = vcmp.eq.s32.totalorder %v3209_v32, 1  ;;  %v1335_v32 = vld [vmem:[#allocation11 + $0x10] sm:$0xff] }
 0x2b5   :  { %v583_v38 = vadd.f32 %v1771_v37, %v1638_v28  ;;  %v1772_v39 = vpop.f32.mrb[12].mxu0  ;;  %v681_v49 = vmax.f32 %v663_v36, 0.0  ;;  %v856_v36 = vld [vmem:[#allocation6 + $0x198] sm:$0xff] }
 0x2b6   :  { %v1773_v40 = vpop.f32.mrb[13].mxu0  ;;  %v2522_v37 = vpack.c.bf16 %v856_v36, %v855_v35 }
 0x2b7   :  { %v668_v41 = vadd.f32 %v2069_v25, %v583_v38  ;;  %v1774_v42 = vadd.f32 %v1773_v40, %v1772_v39  ;;  %v891_v38 = vld [vmem:[#allocation6 + $0x2b0] sm:$0xff]  ;;  %v892_v39 = vld [vmem:[#allocation6 + $0x2b8] sm:$0xff] }
 0x2b8   :  { %v2560_v40 = vpack.c.bf16 %v892_v39, %v891_v38 }
 0x2b9   :  { %v588_v43 = vadd.f32 %v1774_v42, %v1638_v28  ;;  %v1775_v44 = vpop.f32.mrb[14].mxu0  ;;  %v682_v53 = vmax.f32 %v668_v41, 0.0  ;;  %v873_v41 = vld [vmem:[#allocation6 + $0x220] sm:$0xff]  ;;  %v874_v42 = vld [vmem:[#allocation6 + $0x228] sm:$0xff] }
 0x2ba   :  { %v1776_v45 = vpop.f32.mrb[15].mxu0 }
 0x2bb   :  { %v673_v46 = vadd.f32 %v672_v34, %v588_v43  ;;  %v1777_v47 = vadd.f32 %v1776_v45, %v1775_v44  ;;  %v2524_v43 = vpack.c.bf16 %v874_v42, %v873_v41  ;;  %v857_v44 = vld [vmem:[#allocation6 + $0x1a0] sm:$0xff]  ;;  %v858_v45 = vld [vmem:[#allocation6 + $0x1a8] sm:$0xff] }
 0x2bd   :  { %v593_v50 = vadd.f32 %v1777_v47, %v1638_v28  ;;  %v683_v59 = vmax.f32 %v673_v46, 0.0  ;;  %v2526_v46 = vpack.c.bf16 %v858_v45, %v857_v44  ;;  %v893_v47 = vld [vmem:[#allocation6 + $0x2c0] sm:$0xff] }
 0x2bf   :  { %v678_v48 = vadd.f32 %v2072_v31, %v593_v50  ;;  %v894_v50 = vld [vmem:[#allocation6 + $0x2c8] sm:$0xff] }
 0x2c1   :  { %v684_v3 = vmax.f32 %v678_v48, 0.0  ;;  %v2564_v48 = vpack.c.bf16 %v894_v50, %v893_v47 }
 0x2cd   :  { %v2107_v52 = vpop.f32.mrb[16].mxu0 }
 0x2ce   :  { %v780_v54 = vadd.f32 %v2107_v52, %v1647_v51  ;;  %v774_v55 = vpop.f32.mrb[17].mxu0  ;;  %v876_v52 = vld [vmem:[#allocation6 + $0x238] sm:$0xff] }
 0x2cf   :  { %v775_v56 = vadd.f32 %v1647_v51, %v774_v55  ;;  %v860_v55 = vld [vmem:[#allocation6 + $0x1b8] sm:$0xff] }
 0x2d0   :  { %v794_v60 = vadd.f32 %v780_v54, %v682_v53  ;;  %v859_v54 = vld [vmem:[#allocation6 + $0x1b0] sm:$0xff] }
 0x2d1   :  { %v793_v61 = vadd.f32 %v775_v56, %v681_v49  ;;  %v2110_v63 = vpop.f32.mrb[18].mxu0  ;;  %v2530_v49 = vpack.c.bf16 %v860_v55, %v859_v54  ;;  %v895_v56 = vld [vmem:[#allocation6 + $0x2d0] sm:$0xff] }
 0x2d2   :  { %v3182_v2 = vmax.f32 %v794_v60, 0.0  ;;  %v790_v4 = vadd.f32 %v2110_v63, %v1647_v51  ;;  %v784_v0 = vpop.f32.mrb[19].mxu0  ;;  %v896_v60 = vld [vmem:[#allocation6 + $0x2d8] sm:$0xff]  ;;  %v877_v63 = vld [vmem:[#allocation6 + $0x240] sm:$0xff] }
 0x2d3   :  { %v797_v17 = vmax.f32 %v793_v61, 0.0  ;;  %v785_v9 = vadd.f32 %v1647_v51, %v784_v0  ;;  %v875_v51 = vld [vmem:[#allocation6 + $0x230] sm:$0xff]  ;;  %v2568_v61 = vpack.c.bf16 %v896_v60, %v895_v56  ;;  %v2532_v1 = vpack.c.bf16 %v878_v8, %v877_v63 }
 0x2d4   :  { %904 = vst [vmem:[#allocation2 + $0x10] sm:$0xff] %v3182_v2  ;;  %v796_v10 = vadd.f32 %v790_v4, %v684_v3  ;;  %v2528_v53 = vpack.c.bf16 %v876_v52, %v875_v51  ;;  %v861_v3 = vld [vmem:[#allocation6 + $0x1c0] sm:$0xff]  ;;  %v862_v4 = vld [vmem:[#allocation6 + $0x1c8] sm:$0xff] }
 0x2d5   :  { %903 = vst [vmem:[#allocation2 + $0x8] sm:$0xff] %v797_v17  ;;  %v795_v12 = vadd.f32 %v785_v9, %v683_v59  ;;  %2143 = vmatprep.mubr.f32.mxu0 %v797_v17  ;;  %v2534_v0 = vpack.c.bf16 %v862_v4, %v861_v3  ;;  %v897_v17 = vld [vmem:[#allocation6 + $0x2e0] sm:$0xff]  ;;  %v898_v59 = vld [vmem:[#allocation6 + $0x2e8] sm:$0xff] }
 0x2d6   :  { %v3185_v15 = vmax.f32 %v796_v10, 0.0  ;;  %2144 = vmatmul.mubr.f32.vlgmr.msra.gmra.mrb[20].mxu0 %v3182_v2  ;;  %v2572_v9 = vpack.c.bf16 %v898_v59, %v897_v17  ;;  %v879_v10 = vld [vmem:[#allocation6 + $0x250] sm:$0xff] }
 0x2d7   :  { %v799_v16 = vmax.f32 %v795_v12, 0.0  ;;  %2551 = vmatpush3.bf16.msra.mxu0 %v2548_v21  ;;  %v2520_v21 = vpack.c.bf16 %v872_v5, %v871_v20  ;;  %v881_v20 = vld [vmem:[#allocation6 + $0x260] sm:$0xff]  ;;  %v882_v5 = vld [vmem:[#allocation6 + $0x268] sm:$0xff] }
 0x2d8   :  { %906 = vst [vmem:[#allocation2 + $0x20] sm:$0xff] %v3185_v15  ;;  %2553 = vmatprep.subr.bf16.mxu0 %v2552_v11 }
 0x2d9   :  { %905 = vst [vmem:[#allocation2 + $0x18] sm:$0xff] %v799_v16  ;;  %2146 = vmatprep.mubr.f32.mxu0 %v799_v16  ;;  %v2538_v16 = vpack.c.bf16 %v864_v14, %v863_v13  ;;  %v1333_v13 = vld [vmem:[#allocation11] sm:$0xff]  ;;  %v1334_v14 = vld [vmem:[#allocation11 + $0x8] sm:$0xff] }
 0x2da   :  { %2147 = vmatmul.mubr.f32.gmra.mrb[22].mxu0 %v3185_v15  ;;  %v2605_v6 = vpack.c.bf16 %v1334_v14, %v1333_v13 }
 0x2db   :  { %2555 = vmatpush3.bf16.msra.mxu0 %v2552_v11  ;;  %v880_v11 = vld [vmem:[#allocation6 + $0x258] sm:$0xff] }
 0x2dc   :  { %v939_v24 = vld [vmem:[#allocation2 + $0x6] sm:$0xff]  ;;  %2557 = vmatprep.subr.bf16.mxu0 %v2556_v62  ;;  %v940_v26 = vld [vmem:[#allocation2 + $0xe] sm:$0xff]  ;;  %v2536_v12 = vpack.c.bf16 %v880_v11, %v879_v10 }
 0x2dd   :  { %v907_v25 = vld [vmem:[#allocation2 + $0x4] sm:$0xff]  ;;  %1651 = vmatprep.mubr.msk.f32.mxu1 %vm265_vm14, %v939_v24  ;;  %v908_v28 = vld [vmem:[#allocation2 + $0xc] sm:$0xff] }
 0x2de   :  { %1652 = vmatmul.mubr.msk.f32.vlgmr.msra.gmra.mrb[8].mxu1 %vm931_vm4, %v907_v25  ;;  %v865_v24 = vld [vmem:[#allocation6 + $0x1e0] sm:$0xff]  ;;  %v866_v25 = vld [vmem:[#allocation6 + $0x1e8] sm:$0xff] }
 0x2df   :  { %1653 = vmatprep.mubr.msk.f32.mxu1 %vm266_vm15, %v940_v26  ;;  %2519 = vmatpush3.bf16.msra.mxu1 %v2518_v23  ;;  %v2540_v23 = vpack.c.bf16 %v882_v5, %v881_v20  ;;  %v883_v26 = vld [vmem:[#allocation6 + $0x270] sm:$0xff]  ;;  %v1355_v20 = vld [vmem:[#allocation9 + $0x20] sm:$0xff]  ;;  %v1356_v5 = vld [vmem:[#allocation9 + $0x28] sm:$0xff] }
 0x2e0   :  { %2521 = vmatprep.subr.bf16.mxu1 %v2520_v21  ;;  %2559 = vmatpush3.bf16.msra.mxu0 %v2556_v62  ;;  %v941_v30 = vld [vmem:[#allocation2 + $0x16] sm:$0xff]  ;;  %v942_v33 = vld [vmem:[#allocation2 + $0x1e] sm:$0xff]  ;;  %v2576_v62 = vpack.c.bf16 %v900_v19, %v899_v18  ;;  %v2542_v21 = vpack.c.bf16 %v866_v25, %v865_v24  ;;  %v2584_v18 = vpack.c.bf16 %v1354_v29, %v1353_v22  ;;  %v1337_v24 = vld [vmem:[#allocation11 + $0x20] sm:$0xff] }
 0x2e1   :  { %v909_v31 = vld [vmem:[#allocation2 + $0x14] sm:$0xff]  ;;  %v910_v34 = vld [vmem:[#allocation2 + $0x1c] sm:$0xff]  ;;  %2561 = vmatprep.subr.bf16.mxu0 %v2560_v40 }
 0x2e2   :  { %1654 = vmatmul.mubr.msk.f32.gmra.mrb[10].mxu1 %vm932_vm5, %v908_v28  ;;  %v884_v28 = vld [vmem:[#allocation6 + $0x278] sm:$0xff]  ;;  %v1338_v25 = vld [vmem:[#allocation11 + $0x28] sm:$0xff] }
 0x2e3   :  { %1655 = vmatprep.mubr.msk.f32.mxu1 %vm267_vm1, %v941_v30  ;;  %2523 = vmatpush3.bf16.msra.mxu1 %v2522_v37  ;;  %v2544_v30 = vpack.c.bf16 %v884_v28, %v883_v26  ;;  %v1336_v19 = vld [vmem:[#allocation11 + $0x18] sm:$0xff]  ;;  %v1357_v26 = vld [vmem:[#allocation9 + $0x30] sm:$0xff] }
 0x2e4   :  { %2525 = vmatprep.subr.bf16.mxu1 %v2524_v43  ;;  %2563 = vmatpush3.bf16.msra.mxu0 %v2560_v40  ;;  %v1650_v40 = vld [vmem:[%s3290_s3 + $0x1] ss:$0 sm:$0xff] }
 0x2e5   :  { %2565 = vmatprep.subr.bf16.mxu0 %v2564_v48  ;;  %v1358_v28 = vld [vmem:[#allocation9 + $0x38] sm:$0xff] }
 0x2e6   :  { %1656 = vmatmul.mubr.msk.f32.gmra.mrb[12].mxu1 %vm933_vm6, %v909_v31  ;;  %v867_v31 = vld [vmem:[#allocation6 + $0x1f0] sm:$0xff] }
 0x2e7   :  { %1657 = vmatprep.mubr.msk.f32.mxu1 %vm268_vm3, %v942_v33  ;;  %2527 = vmatpush3.bf16.msra.mxu1 %v2526_v46  ;;  %v868_v33 = vld [vmem:[#allocation6 + $0x1f8] sm:$0xff] }
 0x2e8   :  { %2529 = vmatprep.subr.bf16.mxu1 %v2528_v53  ;;  %2567 = vmatpush3.bf16.msra.mxu0 %v2564_v48 }
 0x2e9   :  { %2569 = vmatprep.subr.bf16.mxu0 %v2568_v61 }
 0x2ea   :  { %1658 = vmatmul.mubr.msk.f32.gmra.mrb[14].mxu1 %vm934_vm7, %v910_v34  ;;  %v2546_v34 = vpack.c.bf16 %v868_v33, %v867_v31  ;;  %v1339_v31 = vld [vmem:[#allocation11 + $0x30] sm:$0xff]  ;;  %v1340_v33 = vld [vmem:[#allocation11 + $0x38] sm:$0xff] }
 0x2eb   :  { %2531 = vmatpush3.bf16.msra.mxu1 %v2530_v49 }
 0x2ec   :  { %2533 = vmatprep.subr.bf16.mxu1 %v2532_v1  ;;  %2571 = vmatpush3.bf16.msra.mxu0 %v2568_v61 }
 0x2ed   :  { %2573 = vmatprep.subr.bf16.mxu0 %v2572_v9 }
 0x2ef   :  { %2535 = vmatpush3.bf16.msra.mxu1 %v2534_v0 }
 0x2f0   :  { %2537 = vmatprep.subr.bf16.mxu1 %v2536_v12  ;;  %2575 = vmatpush3.bf16.msra.mxu0 %v2572_v9  ;;  %v1352_v12 = vld [vmem:[#allocation9 + $0x8] sm:$0xff] }
 0x2f1   :  { %2577 = vmatprep.subr.bf16.mxu0 %v2576_v62  ;;  %v2581_v27 = vpack.c.bf16 %v1352_v12, %v1351_v57  ;;  %v1524_v57 = vld [vmem:[#allocation12 + $0x38] sm:$0xff] }
 0x2f3   :  { %2539 = vmatpush3.bf16.msra.mxu1 %v2538_v16  ;;  %v2846_v16 = vmov 0.0|0.0  }
 0x2f4   :  { %2541 = vmatprep.subr.bf16.mxu1 %v2540_v23  ;;  %2579 = vmatpush3.bf16.msra.mxu0 %v2576_v62  ;;  %v2608_v62 = vpack.c.bf16 %v1336_v19, %v1335_v32  ;;  %v2587_v23 = vpack.c.bf16 %v1356_v5, %v1355_v20  ;;  %v1659_v32 = vld [vmem:[%s3292_s5 + $0x1] ss:$0 sm:$0xff] }
 0x2f5   :  { %2604 = vmatprep.subr.bf16.mxu0 %v2846_v16 }
 0x2f7   :  { %2543 = vmatpush3.bf16.msra.mxu1 %v2542_v21  ;;  %v2611_v21 = vpack.c.bf16 %v1338_v25, %v1337_v24 }
 0x2f8   :  { %2545 = vmatprep.subr.bf16.mxu1 %v2544_v30  ;;  %v2590_v30 = vpack.c.bf16 %v1358_v28, %v1357_v26 }
 0x2fb   :  { %2547 = vmatpush3.bf16.msra.mxu1 %v2546_v34  ;;  %v2614_v34 = vpack.c.bf16 %v1340_v33, %v1339_v31 }
 0x2fc   :  { %2580 = vmatprep.subr.bf16.mxu1 %v2846_v16 }
 0x3a9   :  { %v2145_v35 = vpop.f32.mrb[20].mxu0 }
 0x3aa   :  { %v1104_v36 = vpop.f32.mrb[21].mxu0 }
 0x3ad   :  { %v2148_v37 = vpop.f32.mrb[22].mxu0 }
 0x3ae   :  { %v1114_v38 = vpop.f32.mrb[23].mxu0 }
 0x3b1   :  { %v1850_v39 = vpop.f32.mrb[8].mxu1 }
 0x3b2   :  { %v1851_v41 = vpop.f32.mrb[9].mxu1 }
 0x3b3   :  { %v1852_v42 = vadd.f32 %v1851_v41, %v1850_v39  ;;  %v1342_v39 = vld [vmem:[#allocation11 + $0x48] sm:$0xff]  ;;  %v1361_v41 = vld [vmem:[#allocation9 + $0x50] sm:$0xff] }
 0x3b5   :  { %v1020_v43 = vadd.f32 %v1852_v42, %v1650_v40  ;;  %v1853_v44 = vpop.f32.mrb[10].mxu1  ;;  %v1362_v42 = vld [vmem:[#allocation9 + $0x58] sm:$0xff] }
 0x3b6   :  { %v1854_v45 = vpop.f32.mrb[11].mxu1 }
 0x3b7   :  { %v1855_v46 = vadd.f32 %v1854_v45, %v1853_v44  ;;  %v1105_v47 = vadd.f32 %v1104_v36, %v1020_v43  ;;  %v1360_v36 = vld [vmem:[#allocation9 + $0x48] sm:$0xff]  ;;  %v2596_v43 = vpack.c.bf16 %v1362_v42, %v1361_v41  ;;  %v1343_v44 = vld [vmem:[#allocation11 + $0x50] sm:$0xff]  ;;  %v1344_v45 = vld [vmem:[#allocation11 + $0x58] sm:$0xff] }
 0x3b9   :  { %v1025_v50 = vadd.f32 %v1855_v46, %v1650_v40  ;;  %v1856_v48 = vpop.f32.mrb[12].mxu1  ;;  %v1123_v51 = vmax.f32 %v1105_v47, 0.0  ;;  %v2620_v46 = vpack.c.bf16 %v1344_v45, %v1343_v44  ;;  %v1349_v47 = vld [vmem:[%s3295_s8] sm:$0x3]  ;;  %v1526_v44 = vld [vmem:[#allocation12 + $0x48] sm:$0xff] }
 0x3ba   :  { %v1857_v52 = vpop.f32.mrb[13].mxu1  ;;  %2667 = vtanh.f32 %v1349_v47 }
 0x3bb   :  { %v1110_v53 = vadd.f32 %v2145_v35, %v1025_v50  ;;  %v1858_v54 = vadd.f32 %v1857_v52, %v1856_v48  ;;  %2181 = vmatprep.mubr.f32.mxu0 %v1123_v51  ;;  %1127 = vst [vmem:[#allocation2 + $0x8] sm:$0xff] %v1123_v51  ;;  %v1359_v35 = vld [vmem:[#allocation9 + $0x40] sm:$0xff]  ;;  %v1364_v48 = vld [vmem:[#allocation9 + $0x68] sm:$0xff] }
 0x3bc   :  { %v1363_v50 = vld [vmem:[#allocation9 + $0x60] sm:$0xff] }
 0x3bd   :  { %v1124_v55 = vmax.f32 %v1110_v53, 0.0  ;;  %v1030_v49 = vadd.f32 %v1858_v54, %v1650_v40  ;;  %v1859_v56 = vpop.f32.mrb[14].mxu1  ;;  %v2599_v51 = vpack.c.bf16 %v1364_v48, %v1363_v50  ;;  %v1345_v52 = vld [vmem:[#allocation11 + $0x60] sm:$0xff]  ;;  %v1346_v53 = vld [vmem:[#allocation11 + $0x68] sm:$0xff] }
 0x3be   :  { %v1860_v60 = vpop.f32.mrb[15].mxu1  ;;  %v2623_v54 = vpack.c.bf16 %v1346_v53, %v1345_v52  ;;  %v1529_v50 = vld [vmem:[#allocation12 + $0x60] sm:$0xff]  ;;  %v1530_v48 = vld [vmem:[#allocation12 + $0x68] sm:$0xff]  ;;  %v1532_v52 = vld [vmem:[#allocation12 + $0x78] sm:$0xff] }
 0x3bf   :  { %1128 = vst [vmem:[#allocation2 + $0x10] sm:$0xff] %v1124_v55  ;;  %v1861_v61 = vadd.f32 %v1860_v60, %v1859_v56  ;;  %2182 = vmatmul.mubr.f32.vlgmr.msra.gmra.mrb[24].mxu0 %v1124_v55  ;;  %v1115_v63 = vadd.f32 %v1114_v38, %v1030_v49  ;;  %v1341_v38 = vld [vmem:[#allocation11 + $0x40] sm:$0xff]  ;;  %v1365_v55 = vld [vmem:[#allocation9 + $0x70] sm:$0xff]  ;;  %v1366_v49 = vld [vmem:[#allocation9 + $0x78] sm:$0xff] }
 0x3c0   :  { %2606 = vmatpush3.bf16.msra.mxu0 %v2605_v6  ;;  %v2602_v56 = vpack.c.bf16 %v1366_v49, %v1365_v55  ;;  %v1347_v60 = vld [vmem:[#allocation11 + $0x70] sm:$0xff]  ;;  %v1668_v55 = vld [vmem:[%s3298_s11] ss:$0 sm:$0xff] }
 0x3c1   :  { %v1035_v8 = vadd.f32 %v1861_v61, %v1650_v40  ;;  %v1125_v1 = vmax.f32 %v1115_v63, 0.0  ;;  %2607 = vmatprep.subr.bf16.mxu0 %v2846_v16  ;;  %v2617_v40 = vpack.c.bf16 %v1342_v39, %v1341_v38  ;;  %v1348_v61 = vld [vmem:[#allocation11 + $0x78] sm:$0xff] }
 0x3c2   :  { %v1139_v3 = vld [vmem:[#allocation2 + $0x6] sm:$0xff]  ;;  %v2626_v63 = vpack.c.bf16 %v1348_v61, %v1347_v60 }
 0x3c3   :  { %v1131_v4 = vld [vmem:[#allocation2 + $0x4] sm:$0xff]  ;;  %1660 = vmatprep.mubr.msk.f32.mxu1 %vm265_vm14, %v1139_v3  ;;  %2184 = vmatprep.mubr.f32.mxu0 %v1125_v1  ;;  %1129 = vst [vmem:[#allocation2 + $0x18] sm:$0xff] %v1125_v1  ;;  %v1120_v0 = vadd.f32 %v2148_v37, %v1035_v8  ;;  %v2593_v37 = vpack.c.bf16 %v1360_v36, %v1359_v35 }
 0x3c4   :  { %1661 = vmatmul.mubr.msk.f32.vlgmr.msra.gmra.mrb[16].mxu1 %vm931_vm4, %v1131_v4  ;;  %2609 = vmatpush3.bf16.msra.mxu0 %v2608_v62  ;;  %v2671_v8 = vld [vmem:[#allocation2] sm:$0xff]  ;;  %v2668_v1 = vpop.eup %2667  ;;  %v1517_v3 = vld [vmem:[#allocation12] sm:$0xff]  ;;  %v1518_v4 = vld [vmem:[#allocation12 + $0x8] sm:$0xff] }
 0x3c5   :  { %v1126_v17 = vmax.f32 %v1120_v0, 0.0  ;;  %2582 = vmatpush3.bf16.msra.mxu1 %v2581_v27  ;;  %2610 = vmatprep.subr.bf16.mxu0 %v2846_v16  ;;  %v1519_v0 = vld [vmem:[#allocation12 + $0x10] sm:$0xff] }
 0x3c6   :  { %v1140_v59 = vld [vmem:[#allocation2 + $0xe] sm:$0xff]  ;;  %2583 = vmatprep.subr.bf16.mxu1 %v2846_v16 }
 0x3c7   :  { %v1132_v9 = vld [vmem:[#allocation2 + $0xc] sm:$0xff]  ;;  %1662 = vmatprep.mubr.msk.f32.mxu1 %vm266_vm15, %v1140_v59  ;;  %2185 = vmatmul.mubr.f32.gmra.mrb[26].mxu0 %v1126_v17  ;;  %1130 = vst [vmem:[#allocation2 + $0x20] sm:$0xff] %v1126_v17  ;;  %v2629_v17 = vpack.c.bf16 %v1518_v4, %v1517_v3  ;;  %v1520_v59 = vld [vmem:[#allocation12 + $0x18] sm:$0xff] }
 0x3c8   :  { %1663 = vmatmul.mubr.msk.f32.gmra.mrb[18].mxu1 %vm932_vm5, %v1132_v9  ;;  %2612 = vmatpush3.bf16.msra.mxu0 %v2611_v21  ;;  %v2632_v9 = vpack.c.bf16 %v1520_v59, %v1519_v0 }
 0x3c9   :  { %2585 = vmatpush3.bf16.msra.mxu1 %v2584_v18  ;;  %2613 = vmatprep.subr.bf16.mxu0 %v2846_v16 }
 0x3ca   :  { %v1141_v10 = vld [vmem:[#allocation2 + $0x16] sm:$0xff]  ;;  %2586 = vmatprep.subr.bf16.mxu1 %v2846_v16  ;;  %2254 = vmatprep.mubr.msk.f32.mxu0 %vm2847_vm8, %v2671_v8 }
 0x3cb   :  { %v1133_v58 = vld [vmem:[#allocation2 + $0x14] sm:$0xff]  ;;  %1664 = vmatprep.mubr.msk.f32.mxu1 %vm267_vm1, %v1141_v10  ;;  %v1521_v10 = vld [vmem:[#allocation12 + $0x20] sm:$0xff] }
 0x3cc   :  { %1665 = vmatmul.mubr.msk.f32.gmra.mrb[20].mxu1 %vm933_vm6, %v1133_v58  ;;  %2615 = vmatpush3.bf16.msra.mxu0 %v2614_v34  ;;  %v1522_v58 = vld [vmem:[#allocation12 + $0x28] sm:$0xff] }
 0x3cd   :  { %2588 = vmatpush3.bf16.msra.mxu1 %v2587_v23  ;;  %2616 = vmatprep.subr.bf16.mxu0 %v2846_v16 }
 0x3ce   :  { %v1142_v7 = vld [vmem:[#allocation2 + $0x1e] sm:$0xff]  ;;  %2589 = vmatprep.subr.bf16.mxu1 %v2846_v16 }
 0x3cf   :  { %v1134_v11 = vld [vmem:[#allocation2 + $0x1c] sm:$0xff]  ;;  %1666 = vmatprep.mubr.msk.f32.mxu1 %vm268_vm3, %v1142_v7  ;;  %v2635_v7 = vpack.c.bf16 %v1522_v58, %v1521_v10 }
 0x3d0   :  { %1667 = vmatmul.mubr.msk.f32.gmra.mrb[22].mxu1 %vm934_vm7, %v1134_v11  ;;  %2618 = vmatpush3.bf16.msra.mxu0 %v2617_v40  ;;  %v1523_v11 = vld [vmem:[#allocation12 + $0x30] sm:$0xff] }
 0x3d1   :  { %2591 = vmatpush3.bf16.msra.mxu1 %v2590_v30  ;;  %2619 = vmatprep.subr.bf16.mxu0 %v2846_v16  ;;  %v2638_v12 = vpack.c.bf16 %v1524_v57, %v1523_v11 }
 0x3d2   :  { %2592 = vmatprep.subr.bf16.mxu1 %v2846_v16  ;;  %2219 = vmatprep.mubr.msk.f32.mxu1 %vm2847_vm8, %v2671_v8 }
 0x3d4   :  { %2621 = vmatpush3.bf16.msra.mxu0 %v2620_v46  ;;  %v1528_v46 = vld [vmem:[#allocation12 + $0x58] sm:$0xff] }
 0x3d5   :  { %2594 = vmatpush3.bf16.msra.mxu1 %v2593_v37  ;;  %2622 = vmatprep.subr.bf16.mxu0 %v2846_v16 }
 0x3d6   :  { %2595 = vmatprep.subr.bf16.mxu1 %v2846_v16 }
 0x3d8   :  { %2624 = vmatpush3.bf16.msra.mxu0 %v2623_v54 }
 0x3d9   :  { %2597 = vmatpush3.bf16.msra.mxu1 %v2596_v43  ;;  %2625 = vmatprep.subr.bf16.mxu0 %v2846_v16  ;;  %v1525_v43 = vld [vmem:[#allocation12 + $0x40] sm:$0xff] }
 0x3da   :  { %2598 = vmatprep.subr.bf16.mxu1 %v2846_v16  ;;  %v2641_v45 = vpack.c.bf16 %v1526_v44, %v1525_v43 }
 0x3dc   :  { %2627 = vmatpush3.bf16.msra.mxu0 %v2626_v63 }
 0x3dd   :  { %2600 = vmatpush3.bf16.msra.mxu1 %v2599_v51  ;;  %v1531_v51 = vld [vmem:[#allocation12 + $0x70] sm:$0xff] }
 0x3de   :  { %2601 = vmatprep.subr.bf16.mxu1 %v2846_v16  ;;  %v2650_v53 = vpack.c.bf16 %v1532_v52, %v1531_v51 }
 0x3e1   :  { %2603 = vmatpush3.bf16.msra.mxu1 %v2602_v56 }
 0x3e2   :  { %2628 = vmatprep.subr.bf16.mxu1 %v2846_v16 }
 0x3e4   :  { %2220 = vmatmul.mubr.f32.vlgmr.msra.gmra.mrb[24].mxu1 %v2668_v1 }
 0x3e5   :  { %2289 = vmatprep.mubr.msk.f32.mxu1 %vm2847_vm8, %v2671_v8  ;;  %2630 = vmatpush3.bf16.msra.mxu1 %v2629_v17  ;;  %v1669_v8 = vld [vmem:[%s3300_s13] ss:$0 sm:$0xff] }
 0x3e6   :  { %2631 = vmatprep.subr.bf16.mxu1 %v2846_v16 }
 0x3e9   :  { %2633 = vmatpush3.bf16.msra.mxu1 %v2632_v9 }
 0x3ea   :  { %2634 = vmatprep.subr.bf16.mxu1 %v2846_v16 }
 0x3ed   :  { %2636 = vmatpush3.bf16.msra.mxu1 %v2635_v7 }
 0x3ee   :  { %2637 = vmatprep.subr.bf16.mxu1 %v2846_v16 }
 0x3f1   :  { %2639 = vmatpush3.bf16.msra.mxu1 %v2638_v12 }
 0x3f2   :  { %2640 = vmatprep.subr.bf16.mxu1 %v2846_v16 }
 0x3f5   :  { %2642 = vmatpush3.bf16.msra.mxu1 %v2641_v45 }
 0x3f6   :  { %2643 = vmatprep.subr.bf16.mxu1 %v2846_v16 }
 0x492   :  { %v2183_v27 = vpop.f32.mrb[24].mxu0 }
 0x493   :  { %v1302_v13 = vpop.f32.mrb[25].mxu0 }
 0x497   :  { %v1914_v14 = vpop.f32.mrb[16].mxu1 }
 0x498   :  { %v1915_v6 = vpop.f32.mrb[17].mxu1 }
 0x49a   :  { %v2186_v22 = vpop.f32.mrb[26].mxu0 }
 0x49b   :  { %v1917_v29 = vpop.f32.mrb[18].mxu1  ;;  %v1311_v18 = vpop.f32.mrb[27].mxu0 }
 0x49c   :  { %v1918_v19 = vpop.f32.mrb[19].mxu1 }
 0x49d   :  { %v1919_v62 = vadd.f32 %v1918_v19, %v1917_v29 }
 0x49f   :  { %v1224_v20 = vadd.f32 %v1919_v62, %v1659_v32  ;;  %v1920_v5 = vpop.f32.mrb[20].mxu1 }
 0x4a0   :  { %v1921_v23 = vpop.f32.mrb[21].mxu1 }
 0x4a1   :  { %v1307_v24 = vadd.f32 %v2183_v27, %v1224_v20 }
 0x4a3   :  { %v1923_v25 = vpop.f32.mrb[22].mxu1  ;;  %v1319_v26 = vmax.f32 %v1307_v24, 0.0 }
 0x4a4   :  { %v1924_v21 = vpop.f32.mrb[23].mxu1 }
 0x4a5   :  { %v1925_v28 = vadd.f32 %v1924_v21, %v1923_v25  ;;  %v1321_v31 = vadd.f32 %v1319_v26, %v3182_v2  ;;  %v1527_v2 = vld [vmem:[#allocation12 + $0x50] sm:$0xff] }
 0x4a6   :  { %v2644_v47 = vpack.c.bf16 %v1528_v46, %v1527_v2 }
 0x4a7   :  { %v1233_v30 = vadd.f32 %v1925_v28, %v1659_v32  ;;  %v1323_v35 = vmax.f32 %v1321_v31, 0.0 }
 0x4a8   :  { %2645 = vmatpush3.bf16.msra.mxu1 %v2644_v47 }
 0x4a9   :  { %v1316_v33 = vadd.f32 %v2186_v22, %v1233_v30  ;;  %v1326_v38 = vrot.slane %v1323_v35, 7  ;;  %2646 = vmatprep.subr.bf16.mxu1 %v2846_v16 }
 0x4ab   :  { %v1320_v34 = vmax.f32 %v1316_v33, 0.0 }
 0x4ad   :  { %v1322_v36 = vadd.f32 %v1320_v34, %v3185_v15  ;;  %v2647_v15 = vpack.c.bf16 %v1530_v48, %v1529_v50 }
 0x4af   :  { %v1324_v37 = vmax.f32 %v1322_v36, 0.0  ;;  %2648 = vmatpush3.bf16.msra.mxu1 %v2647_v15 }
 0x4b0   :  { %2649 = vmatprep.subr.bf16.mxu1 %v2846_v16 }
 0x4b1   :  { %v1329_v39 = vrot.slane %v1324_v37, 6 }
 0x4b3   :  { %v1332_v40 = vsel %vm1331_vm9, %v1326_v38, %v1329_v39  ;;  %2651 = vmatpush3.bf16.msra.mxu1 %v2650_v53 }
 0x4b4   :  { %2255 = vmatmul.mubr.f32.vlgmr.msra.gmra.mrb[28].mxu0 %v1332_v40 }
 0x4b7   :  { %v1433_v41 = vpop.f32.mrb[24].mxu1 }
 0x4b8   :  { %v2221_v42 = vpop.f32.mrb[25].mxu1 }
 0x587   :  { %v1503_v54 = vpop.f32.mrb[28].mxu0 }
 0x588   :  { %v1504_v49 = vadd.f32 %v1503_v54, %v1433_v41  ;;  %v2256_v56 = vpop.f32.mrb[29].mxu0 }
 0x58a   :  { %v1514_v60 = vadd.f32 %v1668_v55, %v1504_v49 }
 0x58c   :  { %v1515_v61 = vmax.f32 %v1514_v60, 0.0 }
 0x58e   :  { %2669 = vtanh.f32 %v1515_v61 }
 0x598   :  { %v2670_v63 = vpop.eup %2669 }
 0x599   :  { %2290 = vmatmul.mubr.f32.vlgmr.msra.gmra.mrb[26].mxu1 %v2670_v63 }
 0x66c   :  { %v1606_v16 = vpop.f32.mrb[26].mxu1 }
 0x66d   :  { %v1607_v1 = vadd.f32 %v1669_v8, %v1606_v16  ;;  %v2291_v3 = vpop.f32.mrb[27].mxu1 }
 0x66f   :  { %1610 = vst [vmem:[#allocation14] sm:$0x3] %v1607_v1 }
 0x670   :  { %2815 = shalt.err (!%p2812_p10)
}
 0x671   :  { %s2816_s0 = scalar_lea.hbm %s3301_s14, 32 }
 0x672   :  { %p2817_p11 = scmp.ne.s32.totalorder %s3301_s14, %s2816_s0  ;;  %p2820_p12 = scmp.lt.u32.totalorder %s2816_s0, %s3301_s14 }
 0x674   :  { %p2822_p13 = pnand %p2820_p12, %p2817_p11 }
 0x676   :  { %2825 = shalt.err (!%p2822_p13)
}
 0x677   :  { %1620 = dma.vmem_to_hbm [thread:$0]  %s1618_s9, 32, %s3301_s14, [#allocation5]  }
 0x678   :  { %2834 = dma.done.wait [#allocation5], 32  }
 0x679   :  { %2835 = vsyncadd [#allocation5], 4294967264 }
 0x67a   :  { %1624 = vsyncpa [#allocation4], 1 }
 0x67b   :  { %1625 = vsyncpa [#allocation7], 1 }
 0x67c   :  { %1626 = vsyncpa [#allocation10], 1 }
 0x67d   :  { %1627 = vsyncpa [#allocation13], 1 }
 0x67e   :  { %1628 = vsyncpa [#allocation5], 1 }

</bundles_post_ra>
